<compile_context>
chip_gen: v6e
topology: v6e:2x2x1
jax: 0.10.0
libtpu: 0.0.40
codegen_flags: <defaults>
</compile_context>

<pallas_src>
import functools
import math

import jax
import jax.numpy as jnp
from jax.experimental import pallas as pl
from jax.experimental.pallas import tpu as pltpu


_INV_SQRT2 = 0.7071067811865476  # 1/sqrt(2) for exact (erf) GELU


# ----------------------------------------------------------------------------
# In-kernel helpers
# ----------------------------------------------------------------------------

def _layernorm(x, g, b, eps):
    mu = jnp.mean(x, axis=-1, keepdims=True)
    var = jnp.mean((x - mu) ** 2, axis=-1, keepdims=True)
    return (x - mu) * jax.lax.rsqrt(var + eps) * g + b


# ----------------------------------------------------------------------------
# Fused encoder kernel: one grid step = (batch element, layer)
# ----------------------------------------------------------------------------

def encoder_kernel(emb_ref, mask_ref, eg_ref, eb_ref,
                   wqkv_ref, bqkv_ref, wo_ref, bo_ref, g1_ref, b1_ref,
                   w1_ref, bi1_ref, w2_ref, bi2_ref, g2_ref, b2_ref,
                   o_ref, *, num_heads, head_dim, scale, eps):
    """Whole BERT encoder layer, fused.

    The output block (1, S, H) has a constant block index along the layer
    axis, so it stays resident in VMEM and acts as the activation carry
    between layers.  Layer 0 initialises it with LayerNorm(embeddings).
    """
    l = pl.program_id(1)
    hidden = num_heads * head_dim

    @pl.when(l == 0)
    def _():
        o_ref[0] = _layernorm(emb_ref[0], eg_ref[...], eb_ref[...], eps)

    x = o_ref[0]                                     # (S, H) f32 carried act.
    m = mask_ref[0]                                  # (1, S) additive mask

    # --- fused Q|K|V projection: one (H, 3H) matmul ---------------------
    qkv = jnp.dot(x.astype(wqkv_ref.dtype), wqkv_ref[0],
                  preferred_element_type=jnp.float32) + bqkv_ref[0]

    # --- per-head attention (static lane slices of the fused activation) -
    ctx_heads = []
    for h in range(num_heads):
        off = h * head_dim
        q_h = qkv[:, off:off + head_dim].astype(jnp.bfloat16)
        k_h = qkv[:, hidden + off:hidden + off + head_dim].astype(jnp.bfloat16)
        v_h = qkv[:, 2 * hidden + off:2 * hidden + off + head_dim].astype(jnp.bfloat16)
        # q @ k^T without an explicit transpose op.
        s = jax.lax.dot_general(q_h, k_h, (((1,), (1,)), ((), ())),
                                preferred_element_type=jnp.float32)
        s = s * scale + m
        s = s - jnp.max(s, axis=-1, keepdims=True)
        p = jnp.exp(s)
        p = p * pl.reciprocal(jnp.sum(p, axis=-1, keepdims=True), approx=True)
        ctx_heads.append(jnp.dot(p.astype(jnp.bfloat16), v_h,
                                 preferred_element_type=jnp.float32))
    ctx = jnp.concatenate(ctx_heads, axis=-1)        # (S, H) f32, lane-dense

    # --- attention output projection + residual + LayerNorm --------------
    attn = jnp.dot(ctx.astype(wo_ref.dtype), wo_ref[0],
                   preferred_element_type=jnp.float32) + bo_ref[0]
    x = _layernorm(attn + x, g1_ref[0], b1_ref[0], eps)

    # --- FFN: GELU(x @ W1 + b1) @ W2 + b2 + residual + LayerNorm ----------
    hmid = jnp.dot(x.astype(w1_ref.dtype), w1_ref[0],
                   preferred_element_type=jnp.float32) + bi1_ref[0]
    hmid = 0.5 * hmid * (1.0 + jax.lax.erf(hmid * _INV_SQRT2))   # exact GELU
    y = jnp.dot(hmid.astype(w2_ref.dtype), w2_ref[0],
                preferred_element_type=jnp.float32) + bi2_ref[0] + x
    o_ref[0] = _layernorm(y, g2_ref[0], b2_ref[0], eps)


def pooler_head_kernel(cls_ref, pw_ref, pb_ref, cw_ref, cb_ref, o_ref):
    """Fused pooler + emotion head: softmax(tanh(cls @ Wp + bp) @ Wc + bc)."""
    pooled = jnp.tanh(jnp.dot(cls_ref[...].astype(pw_ref.dtype), pw_ref[...],
                              preferred_element_type=jnp.float32) + pb_ref[...])
    logits = jnp.dot(pooled.astype(cw_ref.dtype), cw_ref[...],
                     preferred_element_type=jnp.float32) + cb_ref[...]
    logits = logits - jnp.max(logits, axis=-1, keepdims=True)
    e = jnp.exp(logits)
    # exact division so softmax rows sum to 1 within tight tolerance
    o_ref[...] = e / jnp.sum(e, axis=-1, keepdims=True)


# ----------------------------------------------------------------------------
# pallas_call wrappers
# ----------------------------------------------------------------------------

def bert_encoder(emb, add_mask, params, *, batch, seq, hidden, num_heads,
                 num_layers, intermediate, eps=1e-12):
    head_dim = hidden // num_heads
    scale = 1.0 / math.sqrt(head_dim)
    H, I = hidden, intermediate

    def rep(shape):
        # Constant (batch/layer-invariant) block: stays resident in VMEM.
        return pl.BlockSpec(shape, lambda b, l, _s=len(shape): (0,) * _s)

    def per_layer(shape):
        # Per-layer block selected along the stacked leading layer axis.
        return pl.BlockSpec((1,) + shape,
                            lambda b, l, _s=len(shape): (l,) + (0,) * _s)

    in_specs = [
        pl.BlockSpec((1, seq, H), lambda b, l: (b, 0, 0)),   # embeddings
        pl.BlockSpec((1, 1, seq), lambda b, l: (b, 0, 0)),   # additive mask
        rep((1, H)), rep((1, H)),                            # emb LN gamma/beta
        per_layer((H, 3 * H)), per_layer((1, 3 * H)),        # wqkv, bqkv
        per_layer((H, H)), per_layer((1, H)),                # wo, bo
        per_layer((1, H)), per_layer((1, H)),                # ln1 gamma/beta
        per_layer((H, I)), per_layer((1, I)),                # w1, b1
        per_layer((I, H)), per_layer((1, H)),                # w2, b2
        per_layer((1, H)), per_layer((1, H)),                # ln2 gamma/beta
    ]

    return pl.pallas_call(
        functools.partial(encoder_kernel, num_heads=num_heads,
                          head_dim=head_dim, scale=scale, eps=eps),
        out_shape=jax.ShapeDtypeStruct((batch, seq, H), jnp.float32),
        grid=(batch, num_layers),
        in_specs=in_specs,
        out_specs=pl.BlockSpec((1, seq, H), lambda b, l: (b, 0, 0)),
        compiler_params=pltpu.CompilerParams(
            dimension_semantics=("parallel", "arbitrary")),
    )(emb, add_mask, params["emb_ln_g"], params["emb_ln_b"],
      params["wqkv"], params["bqkv"], params["wo"], params["bo"],
      params["ln1_g"], params["ln1_b"],
      params["w1"], params["b1"], params["w2"], params["b2"],
      params["ln2_g"], params["ln2_b"])


def pooler_emotion_head(cls_tok, pool_w, pool_b, cls_w, cls_b):
    bsz, h = cls_tok.shape
    c = cls_w.shape[1]
    return pl.pallas_call(
        pooler_head_kernel,
        out_shape=jax.ShapeDtypeStruct((bsz, c), jnp.float32),
        grid=(1,),
        in_specs=[
            pl.BlockSpec((bsz, h), lambda i: (0, 0)),
            pl.BlockSpec((h, h), lambda i: (0, 0)),
            pl.BlockSpec((1, h), lambda i: (0, 0)),
            pl.BlockSpec((h, c), lambda i: (0, 0)),
            pl.BlockSpec((1, c), lambda i: (0, 0)),
        ],
        out_specs=pl.BlockSpec((bsz, c), lambda i: (0, 0)),
    )(cls_tok, pool_w, pool_b, cls_w, cls_b)


# ----------------------------------------------------------------------------
# Mini BERT-large parameters (deterministic, synthetic; stacked per-layer)
# ----------------------------------------------------------------------------

CFG = dict(vocab=100, max_pos=32, type_vocab=2, hidden=128, layers=2,
           heads=4, intermediate=512, num_classes=7)


def init_params(key, cfg):
    H, I, L = cfg["hidden"], cfg["intermediate"], cfg["layers"]

    def nrm(k, shape, scale=0.02, dtype=jnp.bfloat16):
        return (scale * jax.random.normal(k, shape, dtype=jnp.float32)).astype(dtype)

    keys = iter(jax.random.split(key, 32))
    return {
        "word_emb": nrm(next(keys), (cfg["vocab"], H), dtype=jnp.float32),
        "pos_emb": nrm(next(keys), (cfg["max_pos"], H), dtype=jnp.float32),
        "type_emb": nrm(next(keys), (cfg["type_vocab"], H), dtype=jnp.float32),
        "emb_ln_g": jnp.ones((1, H), jnp.float32),
        "emb_ln_b": jnp.zeros((1, H), jnp.float32),
        # stacked per-layer encoder weights (leading layer axis, bf16 matmuls)
        "wqkv": nrm(next(keys), (L, H, 3 * H)),
        "bqkv": jnp.zeros((L, 1, 3 * H), jnp.float32),
        "wo": nrm(next(keys), (L, H, H)),
        "bo": jnp.zeros((L, 1, H), jnp.float32),
        "ln1_g": jnp.ones((L, 1, H), jnp.float32),
        "ln1_b": jnp.zeros((L, 1, H), jnp.float32),
        "w1": nrm(next(keys), (L, H, I)),
        "b1": jnp.zeros((L, 1, I), jnp.float32),
        "w2": nrm(next(keys), (L, I, H)),
        "b2": jnp.zeros((L, 1, H), jnp.float32),
        "ln2_g": jnp.ones((L, 1, H), jnp.float32),
        "ln2_b": jnp.zeros((L, 1, H), jnp.float32),
        "pool_w": nrm(next(keys), (H, H)),
        "pool_b": jnp.zeros((1, H), jnp.float32),
        "cls_w": nrm(next(keys), (H, cfg["num_classes"])),
        "cls_b": jnp.zeros((1, cfg["num_classes"]), jnp.float32),
    }


# ----------------------------------------------------------------------------
# Forward pass  (mirrors BERTLarge.forward: (emotion, None))
# ----------------------------------------------------------------------------

def bert_large_forward(params, input_ids, attention_mask, cfg):
    B, S = input_ids.shape
    H, nH = cfg["hidden"], cfg["heads"]
    L, I = cfg["layers"], cfg["intermediate"]

    # Embeddings (gather is XLA glue; LayerNorm is fused into the encoder
    # kernel's layer-0 step).
    tok = jnp.take(params["word_emb"], input_ids, axis=0)            # (B,S,H)
    pos = params["pos_emb"][:S][None, :, :]                          # (1,S,H)
    typ = params["type_emb"][0][None, None, :]                       # (1,1,H)
    emb = (tok + pos + typ).astype(jnp.float32)                      # (B,S,H)

    # Additive attention mask (B, 1, S): 0 where attended, -1e4 where padded.
    add_mask = (1.0 - attention_mask.astype(jnp.float32))[:, None, :] * -10000.0

    # Whole encoder stack in one fused pallas_call.
    x = bert_encoder(emb, add_mask, params, batch=B, seq=S, hidden=H,
                     num_heads=nH, num_layers=L, intermediate=I)      # (B,S,H)

    # Pooler tanh(Linear(CLS)) + emotion linear + softmax, fused in one kernel.
    cls_tok = x[:, 0, :]                                             # (B,H)
    emotion = pooler_emotion_head(cls_tok, params["pool_w"], params["pool_b"],
                                  params["cls_w"], params["cls_b"])
    return emotion, None


# ----------------------------------------------------------------------------
# Main
# ----------------------------------------------------------------------------

if __name__ == "__main__":
    key = jax.random.PRNGKey(0)
    pkey, dkey = jax.random.split(key)

    params = init_params(pkey, CFG)

    B, S = 2, 8
    input_ids = jax.random.randint(dkey, (B, S), 0, CFG["vocab"], dtype=jnp.int32)
    attention_mask = jnp.ones((B, S), dtype=jnp.int32)

    fwd = jax.jit(functools.partial(bert_large_forward, cfg=CFG))
    emotion, _ = fwd(params, input_ids, attention_mask)
    emotion = jax.block_until_ready(emotion)

    assert emotion.shape == (B, CFG["num_classes"])
    # rows of a softmax must sum to 1
    assert bool(jnp.all(jnp.abs(jnp.sum(emotion, axis=-1) - 1.0) < 1e-3))
    print("KERNEL_OK")
</pallas_src>

<mosaic_0001>
module attributes {stable_mosaic.version = 11 : i64} {
  func.func @encoder_kernel(%arg0: i32, %arg1: i32, %arg2: memref<1x8x128xf32, #tpu.memory_space<vmem>>, %arg3: memref<1x1x8xf32, #tpu.memory_space<vmem>>, %arg4: memref<1x128xf32, #tpu.memory_space<vmem>>, %arg5: memref<1x128xf32, #tpu.memory_space<vmem>>, %arg6: memref<1x128x384xbf16, #tpu.memory_space<vmem>>, %arg7: memref<1x1x384xf32, #tpu.memory_space<vmem>>, %arg8: memref<1x128x128xbf16, #tpu.memory_space<vmem>>, %arg9: memref<1x1x128xf32, #tpu.memory_space<vmem>>, %arg10: memref<1x1x128xf32, #tpu.memory_space<vmem>>, %arg11: memref<1x1x128xf32, #tpu.memory_space<vmem>>, %arg12: memref<1x128x512xbf16, #tpu.memory_space<vmem>>, %arg13: memref<1x1x512xf32, #tpu.memory_space<vmem>>, %arg14: memref<1x512x128xbf16, #tpu.memory_space<vmem>>, %arg15: memref<1x1x128xf32, #tpu.memory_space<vmem>>, %arg16: memref<1x1x128xf32, #tpu.memory_space<vmem>>, %arg17: memref<1x1x128xf32, #tpu.memory_space<vmem>>, %arg18: memref<1x8x128xf32, #tpu.memory_space<vmem>>) attributes {dimension_semantics = [#tpu.dimension_semantics<parallel>, #tpu.dimension_semantics<arbitrary>], iteration_bounds = array<i64: 2, 2>, scalar_prefetch = 0 : i64, scratch_operands = 0 : i64, tpu.core_type = #tpu.core_type<tc>, window_params = [{transform_indices = @transform_0, window_bounds = array<i64: 1, 8, 128>}, {transform_indices = @transform_1, window_bounds = array<i64: 1, 1, 8>}, {pipeline_mode = #tpu.pipeline_mode<synchronous>, transform_indices = @transform_2, window_bounds = array<i64: 1, 128>}, {pipeline_mode = #tpu.pipeline_mode<synchronous>, transform_indices = @transform_3, window_bounds = array<i64: 1, 128>}, {transform_indices = @transform_4, window_bounds = array<i64: 1, 128, 384>}, {transform_indices = @transform_5, window_bounds = array<i64: 1, 1, 384>}, {transform_indices = @transform_6, window_bounds = array<i64: 1, 128, 128>}, {transform_indices = @transform_7, window_bounds = array<i64: 1, 1, 128>}, {transform_indices = @transform_8, window_bounds = array<i64: 1, 1, 128>}, {transform_indices = @transform_9, window_bounds = array<i64: 1, 1, 128>}, {transform_indices = @transform_10, window_bounds = array<i64: 1, 128, 512>}, {transform_indices = @transform_11, window_bounds = array<i64: 1, 1, 512>}, {transform_indices = @transform_12, window_bounds = array<i64: 1, 512, 128>}, {transform_indices = @transform_13, window_bounds = array<i64: 1, 1, 128>}, {transform_indices = @transform_14, window_bounds = array<i64: 1, 1, 128>}, {transform_indices = @transform_15, window_bounds = array<i64: 1, 1, 128>}, {transform_indices = @transform_16, window_bounds = array<i64: 1, 8, 128>}]} {
    %c0_i32 = arith.constant 0 : i32
    %0 = arith.cmpi eq, %arg1, %c0_i32 : i32
    %1 = arith.extui %0 : i1 to i32
    %c0_i32_0 = arith.constant 0 : i32
    %2 = arith.cmpi ne, %1, %c0_i32_0 : i32
    scf.if %2 {
      %c0_81 = arith.constant 0 : index
      %c0_82 = arith.constant 0 : index
      %c0_83 = arith.constant 0 : index
      %197 = vector.load %arg2[%c0_81, %c0_82, %c0_83] : memref<1x8x128xf32, #tpu.memory_space<vmem>>, vector<1x8x128xf32>
      %198 = vector.shape_cast %197 : vector<1x8x128xf32> to vector<8x128xf32>
      %c0_84 = arith.constant 0 : index
      %c0_85 = arith.constant 0 : index
      %199 = vector.load %arg4[%c0_84, %c0_85] : memref<1x128xf32, #tpu.memory_space<vmem>>, vector<1x128xf32>
      %c0_86 = arith.constant 0 : index
      %c0_87 = arith.constant 0 : index
      %200 = vector.load %arg5[%c0_86, %c0_87] : memref<1x128xf32, #tpu.memory_space<vmem>>, vector<1x128xf32>
      %cst_88 = arith.constant dense<0.000000e+00> : vector<8xf32>
      %201 = vector.multi_reduction <add>, %198, %cst_88 [1] : vector<8x128xf32> to vector<8xf32>
      %202 = vector.shape_cast %201 : vector<8xf32> to vector<8x1xf32>
      %cst_89 = arith.constant 1.280000e+02 : f32
      %203 = vector.broadcast %cst_89 : f32 to vector<8x1xf32>
      %204 = arith.divf %202, %203 : vector<8x1xf32>
      %205 = vector.broadcast %204 : vector<8x1xf32> to vector<8x128xf32>
      %206 = arith.subf %198, %205 : vector<8x128xf32>
      %207 = arith.mulf %206, %206 : vector<8x128xf32>
      %cst_90 = arith.constant dense<0.000000e+00> : vector<8xf32>
      %208 = vector.multi_reduction <add>, %207, %cst_90 [1] : vector<8x128xf32> to vector<8xf32>
      %209 = vector.shape_cast %208 : vector<8xf32> to vector<8x1xf32>
      %cst_91 = arith.constant 1.280000e+02 : f32
      %210 = vector.broadcast %cst_91 : f32 to vector<8x1xf32>
      %211 = arith.divf %209, %210 : vector<8x1xf32>
      %212 = vector.broadcast %204 : vector<8x1xf32> to vector<8x128xf32>
      %213 = arith.subf %198, %212 : vector<8x128xf32>
      %cst_92 = arith.constant 9.99999996E-13 : f32
      %214 = vector.broadcast %cst_92 : f32 to vector<8x1xf32>
      %215 = arith.addf %211, %214 : vector<8x1xf32>
      %216 = math.rsqrt %215 : vector<8x1xf32>
      %217 = vector.broadcast %216 : vector<8x1xf32> to vector<8x128xf32>
      %218 = arith.mulf %213, %217 : vector<8x128xf32>
      %219 = vector.broadcast %199 : vector<1x128xf32> to vector<8x128xf32>
      %220 = arith.mulf %218, %219 : vector<8x128xf32>
      %221 = vector.broadcast %200 : vector<1x128xf32> to vector<8x128xf32>
      %222 = arith.addf %220, %221 : vector<8x128xf32>
      %c0_93 = arith.constant 0 : index
      %c0_94 = arith.constant 0 : index
      %c0_95 = arith.constant 0 : index
      %223 = vector.load %arg18[%c0_93, %c0_94, %c0_95] : memref<1x8x128xf32, #tpu.memory_space<vmem>>, vector<1x8x128xf32>
      %224 = vector.shape_cast %223 : vector<1x8x128xf32> to vector<8x128xf32>
      %225 = vector.shape_cast %222 : vector<8x128xf32> to vector<1x8x128xf32>
      tpu.vector_store %arg18[%c0_93, %c0_94, %c0_95], %225 {strides = array<i32>} : memref<1x8x128xf32, #tpu.memory_space<vmem>>, vector<1x8x128xf32>,
    } else {
    }
    %c0 = arith.constant 0 : index
    %c0_1 = arith.constant 0 : index
    %c0_2 = arith.constant 0 : index
    %3 = vector.load %arg18[%c0, %c0_1, %c0_2] : memref<1x8x128xf32, #tpu.memory_space<vmem>>, vector<1x8x128xf32>
    %4 = vector.shape_cast %3 : vector<1x8x128xf32> to vector<8x128xf32>
    %c0_3 = arith.constant 0 : index
    %c0_4 = arith.constant 0 : index
    %c0_5 = arith.constant 0 : index
    %5 = vector.load %arg3[%c0_3, %c0_4, %c0_5] : memref<1x1x8xf32, #tpu.memory_space<vmem>>, vector<1x1x8xf32>
    %6 = vector.shape_cast %5 : vector<1x1x8xf32> to vector<1x8xf32>
    %7 = arith.truncf %4 : vector<8x128xf32> to vector<8x128xbf16>
    %c0_6 = arith.constant 0 : index
    %c0_7 = arith.constant 0 : index
    %c0_8 = arith.constant 0 : index
    %8 = vector.load %arg6[%c0_6, %c0_7, %c0_8] : memref<1x128x384xbf16, #tpu.memory_space<vmem>>, vector<1x128x384xbf16>
    %9 = vector.shape_cast %8 : vector<1x128x384xbf16> to vector<128x384xbf16>
    %cst = arith.constant dense<0.000000e+00> : vector<8x384xf32>
    %10 = tpu.matmul %7, %9, %cst {dimension_numbers = #tpu.dot_dimension_numbers<[1], [0], [0], [1], [0, 0, 1, 1], [], []>} : vector<8x128xbf16>, vector<128x384xbf16>, vector<8x384xf32> -> vector<8x384xf32>
    %c0_9 = arith.constant 0 : index
    %c0_10 = arith.constant 0 : index
    %c0_11 = arith.constant 0 : index
    %11 = vector.load %arg7[%c0_9, %c0_10, %c0_11] : memref<1x1x384xf32, #tpu.memory_space<vmem>>, vector<1x1x384xf32>
    %12 = vector.shape_cast %11 : vector<1x1x384xf32> to vector<1x384xf32>
    %13 = vector.broadcast %12 : vector<1x384xf32> to vector<8x384xf32>
    %14 = arith.addf %10, %13 : vector<8x384xf32>
    %15 = vector.extract_strided_slice %14 {offsets = [0, 0], sizes = [8, 32], strides = [1, 1]} : vector<8x384xf32> to vector<8x32xf32>
    %16 = arith.truncf %15 : vector<8x32xf32> to vector<8x32xbf16>
    %17 = vector.extract_strided_slice %14 {offsets = [0, 128], sizes = [8, 32], strides = [1, 1]} : vector<8x384xf32> to vector<8x32xf32>
    %18 = arith.truncf %17 : vector<8x32xf32> to vector<8x32xbf16>
    %19 = vector.extract_strided_slice %14 {offsets = [0, 256], sizes = [8, 32], strides = [1, 1]} : vector<8x384xf32> to vector<8x32xf32>
    %20 = arith.truncf %19 : vector<8x32xf32> to vector<8x32xbf16>
    %cst_12 = arith.constant dense<0.000000e+00> : vector<8x8xf32>
    %21 = tpu.matmul %16, %18, %cst_12 {dimension_numbers = #tpu.dot_dimension_numbers<[1], [1], [0], [0], [0, 0, 1, 0], [], []>} : vector<8x32xbf16>, vector<8x32xbf16>, vector<8x8xf32> -> vector<8x8xf32>
    %cst_13 = arith.constant 0.176776692 : f32
    %22 = vector.broadcast %cst_13 : f32 to vector<8x8xf32>
    %23 = arith.mulf %21, %22 : vector<8x8xf32>
    %24 = vector.broadcast %6 : vector<1x8xf32> to vector<8x8xf32>
    %25 = arith.addf %23, %24 : vector<8x8xf32>
    %cst_14 = arith.constant dense<0xFF800000> : vector<8xf32>
    %26 = vector.multi_reduction <maximumf>, %25, %cst_14 [1] : vector<8x8xf32> to vector<8xf32>
    %27 = vector.shape_cast %26 : vector<8xf32> to vector<8x1xf32>
    %28 = vector.broadcast %27 : vector<8x1xf32> to vector<8x8xf32>
    %29 = arith.subf %25, %28 : vector<8x8xf32>
    %30 = math.exp %29 : vector<8x8xf32>
    %cst_15 = arith.constant dense<0.000000e+00> : vector<8xf32>
    %31 = vector.multi_reduction <add>, %30, %cst_15 [1] : vector<8x8xf32> to vector<8xf32>
    %32 = vector.shape_cast %31 : vector<8xf32> to vector<8x1xf32>
    %33 = tpu.reciprocal %32 {approx = true} : vector<8x1xf32> -> vector<8x1xf32>
    %34 = vector.broadcast %33 : vector<8x1xf32> to vector<8x8xf32>
    %35 = arith.mulf %30, %34 : vector<8x8xf32>
    %36 = arith.truncf %35 : vector<8x8xf32> to vector<8x8xbf16>
    %cst_16 = arith.constant dense<0.000000e+00> : vector<8x32xf32>
    %37 = tpu.matmul %36, %20, %cst_16 {dimension_numbers = #tpu.dot_dimension_numbers<[1], [0], [0], [1], [0, 0, 1, 1], [], []>} : vector<8x8xbf16>, vector<8x32xbf16>, vector<8x32xf32> -> vector<8x32xf32>
    %38 = vector.extract_strided_slice %14 {offsets = [0, 32], sizes = [8, 32], strides = [1, 1]} : vector<8x384xf32> to vector<8x32xf32>
    %39 = arith.truncf %38 : vector<8x32xf32> to vector<8x32xbf16>
    %40 = vector.extract_strided_slice %14 {offsets = [0, 160], sizes = [8, 32], strides = [1, 1]} : vector<8x384xf32> to vector<8x32xf32>
    %41 = arith.truncf %40 : vector<8x32xf32> to vector<8x32xbf16>
    %42 = vector.extract_strided_slice %14 {offsets = [0, 288], sizes = [8, 32], strides = [1, 1]} : vector<8x384xf32> to vector<8x32xf32>
    %43 = arith.truncf %42 : vector<8x32xf32> to vector<8x32xbf16>
    %cst_17 = arith.constant dense<0.000000e+00> : vector<8x8xf32>
    %44 = tpu.matmul %39, %41, %cst_17 {dimension_numbers = #tpu.dot_dimension_numbers<[1], [1], [0], [0], [0, 0, 1, 0], [], []>} : vector<8x32xbf16>, vector<8x32xbf16>, vector<8x8xf32> -> vector<8x8xf32>
    %cst_18 = arith.constant 0.176776692 : f32
    %45 = vector.broadcast %cst_18 : f32 to vector<8x8xf32>
    %46 = arith.mulf %44, %45 : vector<8x8xf32>
    %47 = vector.broadcast %6 : vector<1x8xf32> to vector<8x8xf32>
    %48 = arith.addf %46, %47 : vector<8x8xf32>
    %cst_19 = arith.constant dense<0xFF800000> : vector<8xf32>
    %49 = vector.multi_reduction <maximumf>, %48, %cst_19 [1] : vector<8x8xf32> to vector<8xf32>
    %50 = vector.shape_cast %49 : vector<8xf32> to vector<8x1xf32>
    %51 = vector.broadcast %50 : vector<8x1xf32> to vector<8x8xf32>
    %52 = arith.subf %48, %51 : vector<8x8xf32>
    %53 = math.exp %52 : vector<8x8xf32>
    %cst_20 = arith.constant dense<0.000000e+00> : vector<8xf32>
    %54 = vector.multi_reduction <add>, %53, %cst_20 [1] : vector<8x8xf32> to vector<8xf32>
    %55 = vector.shape_cast %54 : vector<8xf32> to vector<8x1xf32>
    %56 = tpu.reciprocal %55 {approx = true} : vector<8x1xf32> -> vector<8x1xf32>
    %57 = vector.broadcast %56 : vector<8x1xf32> to vector<8x8xf32>
    %58 = arith.mulf %53, %57 : vector<8x8xf32>
    %59 = arith.truncf %58 : vector<8x8xf32> to vector<8x8xbf16>
    %cst_21 = arith.constant dense<0.000000e+00> : vector<8x32xf32>
    %60 = tpu.matmul %59, %43, %cst_21 {dimension_numbers = #tpu.dot_dimension_numbers<[1], [0], [0], [1], [0, 0, 1, 1], [], []>} : vector<8x8xbf16>, vector<8x32xbf16>, vector<8x32xf32> -> vector<8x32xf32>
    %61 = vector.extract_strided_slice %14 {offsets = [0, 64], sizes = [8, 32], strides = [1, 1]} : vector<8x384xf32> to vector<8x32xf32>
    %62 = arith.truncf %61 : vector<8x32xf32> to vector<8x32xbf16>
    %63 = vector.extract_strided_slice %14 {offsets = [0, 192], sizes = [8, 32], strides = [1, 1]} : vector<8x384xf32> to vector<8x32xf32>
    %64 = arith.truncf %63 : vector<8x32xf32> to vector<8x32xbf16>
    %65 = vector.extract_strided_slice %14 {offsets = [0, 320], sizes = [8, 32], strides = [1, 1]} : vector<8x384xf32> to vector<8x32xf32>
    %66 = arith.truncf %65 : vector<8x32xf32> to vector<8x32xbf16>
    %cst_22 = arith.constant dense<0.000000e+00> : vector<8x8xf32>
    %67 = tpu.matmul %62, %64, %cst_22 {dimension_numbers = #tpu.dot_dimension_numbers<[1], [1], [0], [0], [0, 0, 1, 0], [], []>} : vector<8x32xbf16>, vector<8x32xbf16>, vector<8x8xf32> -> vector<8x8xf32>
    %cst_23 = arith.constant 0.176776692 : f32
    %68 = vector.broadcast %cst_23 : f32 to vector<8x8xf32>
    %69 = arith.mulf %67, %68 : vector<8x8xf32>
    %70 = vector.broadcast %6 : vector<1x8xf32> to vector<8x8xf32>
    %71 = arith.addf %69, %70 : vector<8x8xf32>
    %cst_24 = arith.constant dense<0xFF800000> : vector<8xf32>
    %72 = vector.multi_reduction <maximumf>, %71, %cst_24 [1] : vector<8x8xf32> to vector<8xf32>
    %73 = vector.shape_cast %72 : vector<8xf32> to vector<8x1xf32>
    %74 = vector.broadcast %73 : vector<8x1xf32> to vector<8x8xf32>
    %75 = arith.subf %71, %74 : vector<8x8xf32>
    %76 = math.exp %75 : vector<8x8xf32>
    %cst_25 = arith.constant dense<0.000000e+00> : vector<8xf32>
    %77 = vector.multi_reduction <add>, %76, %cst_25 [1] : vector<8x8xf32> to vector<8xf32>
    %78 = vector.shape_cast %77 : vector<8xf32> to vector<8x1xf32>
    %79 = tpu.reciprocal %78 {approx = true} : vector<8x1xf32> -> vector<8x1xf32>
    %80 = vector.broadcast %79 : vector<8x1xf32> to vector<8x8xf32>
    %81 = arith.mulf %76, %80 : vector<8x8xf32>
    %82 = arith.truncf %81 : vector<8x8xf32> to vector<8x8xbf16>
    %cst_26 = arith.constant dense<0.000000e+00> : vector<8x32xf32>
    %83 = tpu.matmul %82, %66, %cst_26 {dimension_numbers = #tpu.dot_dimension_numbers<[1], [0], [0], [1], [0, 0, 1, 1], [], []>} : vector<8x8xbf16>, vector<8x32xbf16>, vector<8x32xf32> -> vector<8x32xf32>
    %84 = vector.extract_strided_slice %14 {offsets = [0, 96], sizes = [8, 32], strides = [1, 1]} : vector<8x384xf32> to vector<8x32xf32>
    %85 = arith.truncf %84 : vector<8x32xf32> to vector<8x32xbf16>
    %86 = vector.extract_strided_slice %14 {offsets = [0, 224], sizes = [8, 32], strides = [1, 1]} : vector<8x384xf32> to vector<8x32xf32>
    %87 = arith.truncf %86 : vector<8x32xf32> to vector<8x32xbf16>
    %88 = vector.extract_strided_slice %14 {offsets = [0, 352], sizes = [8, 32], strides = [1, 1]} : vector<8x384xf32> to vector<8x32xf32>
    %89 = arith.truncf %88 : vector<8x32xf32> to vector<8x32xbf16>
    %cst_27 = arith.constant dense<0.000000e+00> : vector<8x8xf32>
    %90 = tpu.matmul %85, %87, %cst_27 {dimension_numbers = #tpu.dot_dimension_numbers<[1], [1], [0], [0], [0, 0, 1, 0], [], []>} : vector<8x32xbf16>, vector<8x32xbf16>, vector<8x8xf32> -> vector<8x8xf32>
    %cst_28 = arith.constant 0.176776692 : f32
    %91 = vector.broadcast %cst_28 : f32 to vector<8x8xf32>
    %92 = arith.mulf %90, %91 : vector<8x8xf32>
    %93 = vector.broadcast %6 : vector<1x8xf32> to vector<8x8xf32>
    %94 = arith.addf %92, %93 : vector<8x8xf32>
    %cst_29 = arith.constant dense<0xFF800000> : vector<8xf32>
    %95 = vector.multi_reduction <maximumf>, %94, %cst_29 [1] : vector<8x8xf32> to vector<8xf32>
    %96 = vector.shape_cast %95 : vector<8xf32> to vector<8x1xf32>
    %97 = vector.broadcast %96 : vector<8x1xf32> to vector<8x8xf32>
    %98 = arith.subf %94, %97 : vector<8x8xf32>
    %99 = math.exp %98 : vector<8x8xf32>
    %cst_30 = arith.constant dense<0.000000e+00> : vector<8xf32>
    %100 = vector.multi_reduction <add>, %99, %cst_30 [1] : vector<8x8xf32> to vector<8xf32>
    %101 = vector.shape_cast %100 : vector<8xf32> to vector<8x1xf32>
    %102 = tpu.reciprocal %101 {approx = true} : vector<8x1xf32> -> vector<8x1xf32>
    %103 = vector.broadcast %102 : vector<8x1xf32> to vector<8x8xf32>
    %104 = arith.mulf %99, %103 : vector<8x8xf32>
    %105 = arith.truncf %104 : vector<8x8xf32> to vector<8x8xbf16>
    %cst_31 = arith.constant dense<0.000000e+00> : vector<8x32xf32>
    %106 = tpu.matmul %105, %89, %cst_31 {dimension_numbers = #tpu.dot_dimension_numbers<[1], [0], [0], [1], [0, 0, 1, 1], [], []>} : vector<8x8xbf16>, vector<8x32xbf16>, vector<8x32xf32> -> vector<8x32xf32>
    %107 = tpu.concatenate %37, %60, %83, %106 in 1 : vector<8x32xf32>, vector<8x32xf32>, vector<8x32xf32>, vector<8x32xf32> -> vector<8x128xf32>
    %108 = arith.truncf %107 : vector<8x128xf32> to vector<8x128xbf16>
    %c0_32 = arith.constant 0 : index
    %c0_33 = arith.constant 0 : index
    %c0_34 = arith.constant 0 : index
    %109 = vector.load %arg8[%c0_32, %c0_33, %c0_34] : memref<1x128x128xbf16, #tpu.memory_space<vmem>>, vector<1x128x128xbf16>
    %110 = vector.shape_cast %109 : vector<1x128x128xbf16> to vector<128x128xbf16>
    %cst_35 = arith.constant dense<0.000000e+00> : vector<8x128xf32>
    %111 = tpu.matmul %108, %110, %cst_35 {dimension_numbers = #tpu.dot_dimension_numbers<[1], [0], [0], [1], [0, 0, 1, 1], [], []>} : vector<8x128xbf16>, vector<128x128xbf16>, vector<8x128xf32> -> vector<8x128xf32>
    %c0_36 = arith.constant 0 : index
    %c0_37 = arith.constant 0 : index
    %c0_38 = arith.constant 0 : index
    %112 = vector.load %arg9[%c0_36, %c0_37, %c0_38] : memref<1x1x128xf32, #tpu.memory_space<vmem>>, vector<1x1x128xf32>
    %113 = vector.shape_cast %112 : vector<1x1x128xf32> to vector<1x128xf32>
    %114 = vector.broadcast %113 : vector<1x128xf32> to vector<8x128xf32>
    %115 = arith.addf %111, %114 : vector<8x128xf32>
    %116 = arith.addf %115, %4 : vector<8x128xf32>
    %c0_39 = arith.constant 0 : index
    %c0_40 = arith.constant 0 : index
    %c0_41 = arith.constant 0 : index
    %117 = vector.load %arg10[%c0_39, %c0_40, %c0_41] : memref<1x1x128xf32, #tpu.memory_space<vmem>>, vector<1x1x128xf32>
    %118 = vector.shape_cast %117 : vector<1x1x128xf32> to vector<1x128xf32>
    %c0_42 = arith.constant 0 : index
    %c0_43 = arith.constant 0 : index
    %c0_44 = arith.constant 0 : index
    %119 = vector.load %arg11[%c0_42, %c0_43, %c0_44] : memref<1x1x128xf32, #tpu.memory_space<vmem>>, vector<1x1x128xf32>
    %120 = vector.shape_cast %119 : vector<1x1x128xf32> to vector<1x128xf32>
    %cst_45 = arith.constant dense<0.000000e+00> : vector<8xf32>
    %121 = vector.multi_reduction <add>, %116, %cst_45 [1] : vector<8x128xf32> to vector<8xf32>
    %122 = vector.shape_cast %121 : vector<8xf32> to vector<8x1xf32>
    %cst_46 = arith.constant 1.280000e+02 : f32
    %123 = vector.broadcast %cst_46 : f32 to vector<8x1xf32>
    %124 = arith.divf %122, %123 : vector<8x1xf32>
    %125 = vector.broadcast %124 : vector<8x1xf32> to vector<8x128xf32>
    %126 = arith.subf %116, %125 : vector<8x128xf32>
    %127 = arith.mulf %126, %126 : vector<8x128xf32>
    %cst_47 = arith.constant dense<0.000000e+00> : vector<8xf32>
    %128 = vector.multi_reduction <add>, %127, %cst_47 [1] : vector<8x128xf32> to vector<8xf32>
    %129 = vector.shape_cast %128 : vector<8xf32> to vector<8x1xf32>
    %cst_48 = arith.constant 1.280000e+02 : f32
    %130 = vector.broadcast %cst_48 : f32 to vector<8x1xf32>
    %131 = arith.divf %129, %130 : vector<8x1xf32>
    %132 = vector.broadcast %124 : vector<8x1xf32> to vector<8x128xf32>
    %133 = arith.subf %116, %132 : vector<8x128xf32>
    %cst_49 = arith.constant 9.99999996E-13 : f32
    %134 = vector.broadcast %cst_49 : f32 to vector<8x1xf32>
    %135 = arith.addf %131, %134 : vector<8x1xf32>
    %136 = math.rsqrt %135 : vector<8x1xf32>
    %137 = vector.broadcast %136 : vector<8x1xf32> to vector<8x128xf32>
    %138 = arith.mulf %133, %137 : vector<8x128xf32>
    %139 = vector.broadcast %118 : vector<1x128xf32> to vector<8x128xf32>
    %140 = arith.mulf %138, %139 : vector<8x128xf32>
    %141 = vector.broadcast %120 : vector<1x128xf32> to vector<8x128xf32>
    %142 = arith.addf %140, %141 : vector<8x128xf32>
    %143 = arith.truncf %142 : vector<8x128xf32> to vector<8x128xbf16>
    %c0_50 = arith.constant 0 : index
    %c0_51 = arith.constant 0 : index
    %c0_52 = arith.constant 0 : index
    %144 = vector.load %arg12[%c0_50, %c0_51, %c0_52] : memref<1x128x512xbf16, #tpu.memory_space<vmem>>, vector<1x128x512xbf16>
    %145 = vector.shape_cast %144 : vector<1x128x512xbf16> to vector<128x512xbf16>
    %cst_53 = arith.constant dense<0.000000e+00> : vector<8x512xf32>
    %146 = tpu.matmul %143, %145, %cst_53 {dimension_numbers = #tpu.dot_dimension_numbers<[1], [0], [0], [1], [0, 0, 1, 1], [], []>} : vector<8x128xbf16>, vector<128x512xbf16>, vector<8x512xf32> -> vector<8x512xf32>
    %c0_54 = arith.constant 0 : index
    %c0_55 = arith.constant 0 : index
    %c0_56 = arith.constant 0 : index
    %147 = vector.load %arg13[%c0_54, %c0_55, %c0_56] : memref<1x1x512xf32, #tpu.memory_space<vmem>>, vector<1x1x512xf32>
    %148 = vector.shape_cast %147 : vector<1x1x512xf32> to vector<1x512xf32>
    %149 = vector.broadcast %148 : vector<1x512xf32> to vector<8x512xf32>
    %150 = arith.addf %146, %149 : vector<8x512xf32>
    %cst_57 = arith.constant 5.000000e-01 : f32
    %151 = vector.broadcast %cst_57 : f32 to vector<8x512xf32>
    %152 = arith.mulf %151, %150 : vector<8x512xf32>
    %cst_58 = arith.constant 0.707106769 : f32
    %153 = vector.broadcast %cst_58 : f32 to vector<8x512xf32>
    %154 = arith.mulf %150, %153 : vector<8x512xf32>
    %155 = math.erf %154 : vector<8x512xf32>
    %cst_59 = arith.constant 1.000000e+00 : f32
    %156 = vector.broadcast %cst_59 : f32 to vector<8x512xf32>
    %157 = arith.addf %156, %155 : vector<8x512xf32>
    %158 = arith.mulf %152, %157 : vector<8x512xf32>
    %159 = arith.truncf %158 : vector<8x512xf32> to vector<8x512xbf16>
    %c0_60 = arith.constant 0 : index
    %c0_61 = arith.constant 0 : index
    %c0_62 = arith.constant 0 : index
    %160 = vector.load %arg14[%c0_60, %c0_61, %c0_62] : memref<1x512x128xbf16, #tpu.memory_space<vmem>>, vector<1x512x128xbf16>
    %161 = vector.shape_cast %160 : vector<1x512x128xbf16> to vector<512x128xbf16>
    %cst_63 = arith.constant dense<0.000000e+00> : vector<8x128xf32>
    %162 = tpu.matmul %159, %161, %cst_63 {dimension_numbers = #tpu.dot_dimension_numbers<[1], [0], [0], [1], [0, 0, 1, 1], [], []>} : vector<8x512xbf16>, vector<512x128xbf16>, vector<8x128xf32> -> vector<8x128xf32>
    %c0_64 = arith.constant 0 : index
    %c0_65 = arith.constant 0 : index
    %c0_66 = arith.constant 0 : index
    %163 = vector.load %arg15[%c0_64, %c0_65, %c0_66] : memref<1x1x128xf32, #tpu.memory_space<vmem>>, vector<1x1x128xf32>
    %164 = vector.shape_cast %163 : vector<1x1x128xf32> to vector<1x128xf32>
    %165 = vector.broadcast %164 : vector<1x128xf32> to vector<8x128xf32>
    %166 = arith.addf %162, %165 : vector<8x128xf32>
    %167 = arith.addf %166, %142 : vector<8x128xf32>
    %c0_67 = arith.constant 0 : index
    %c0_68 = arith.constant 0 : index
    %c0_69 = arith.constant 0 : index
    %168 = vector.load %arg16[%c0_67, %c0_68, %c0_69] : memref<1x1x128xf32, #tpu.memory_space<vmem>>, vector<1x1x128xf32>
    %169 = vector.shape_cast %168 : vector<1x1x128xf32> to vector<1x128xf32>
    %c0_70 = arith.constant 0 : index
    %c0_71 = arith.constant 0 : index
    %c0_72 = arith.constant 0 : index
    %170 = vector.load %arg17[%c0_70, %c0_71, %c0_72] : memref<1x1x128xf32, #tpu.memory_space<vmem>>, vector<1x1x128xf32>
    %171 = vector.shape_cast %170 : vector<1x1x128xf32> to vector<1x128xf32>
    %cst_73 = arith.constant dense<0.000000e+00> : vector<8xf32>
    %172 = vector.multi_reduction <add>, %167, %cst_73 [1] : vector<8x128xf32> to vector<8xf32>
    %173 = vector.shape_cast %172 : vector<8xf32> to vector<8x1xf32>
    %cst_74 = arith.constant 1.280000e+02 : f32
    %174 = vector.broadcast %cst_74 : f32 to vector<8x1xf32>
    %175 = arith.divf %173, %174 : vector<8x1xf32>
    %176 = vector.broadcast %175 : vector<8x1xf32> to vector<8x128xf32>
    %177 = arith.subf %167, %176 : vector<8x128xf32>
    %178 = arith.mulf %177, %177 : vector<8x128xf32>
    %cst_75 = arith.constant dense<0.000000e+00> : vector<8xf32>
    %179 = vector.multi_reduction <add>, %178, %cst_75 [1] : vector<8x128xf32> to vector<8xf32>
    %180 = vector.shape_cast %179 : vector<8xf32> to vector<8x1xf32>
    %cst_76 = arith.constant 1.280000e+02 : f32
    %181 = vector.broadcast %cst_76 : f32 to vector<8x1xf32>
    %182 = arith.divf %180, %181 : vector<8x1xf32>
    %183 = vector.broadcast %175 : vector<8x1xf32> to vector<8x128xf32>
    %184 = arith.subf %167, %183 : vector<8x128xf32>
    %cst_77 = arith.constant 9.99999996E-13 : f32
    %185 = vector.broadcast %cst_77 : f32 to vector<8x1xf32>
    %186 = arith.addf %182, %185 : vector<8x1xf32>
    %187 = math.rsqrt %186 : vector<8x1xf32>
    %188 = vector.broadcast %187 : vector<8x1xf32> to vector<8x128xf32>
    %189 = arith.mulf %184, %188 : vector<8x128xf32>
    %190 = vector.broadcast %169 : vector<1x128xf32> to vector<8x128xf32>
    %191 = arith.mulf %189, %190 : vector<8x128xf32>
    %192 = vector.broadcast %171 : vector<1x128xf32> to vector<8x128xf32>
    %193 = arith.addf %191, %192 : vector<8x128xf32>
    %c0_78 = arith.constant 0 : index
    %c0_79 = arith.constant 0 : index
    %c0_80 = arith.constant 0 : index
    %194 = vector.load %arg18[%c0_78, %c0_79, %c0_80] : memref<1x8x128xf32, #tpu.memory_space<vmem>>, vector<1x8x128xf32>
    %195 = vector.shape_cast %194 : vector<1x8x128xf32> to vector<8x128xf32>
    %196 = vector.shape_cast %193 : vector<8x128xf32> to vector<1x8x128xf32>
    tpu.vector_store %arg18[%c0_78, %c0_79, %c0_80], %196 {strides = array<i32>} : memref<1x8x128xf32, #tpu.memory_space<vmem>>, vector<1x8x128xf32>,
    return
  }
  func.func @transform_0(%arg0: i32, %arg1: i32) -> (i32, i32, i32) {
    %c0_i32 = arith.constant 0 : i32
    %c0_i32_0 = arith.constant 0 : i32
    %c0_i32_1 = arith.constant 0 : i32
    return %arg0, %c0_i32, %c0_i32_0 : i32, i32, i32
  }
  func.func @transform_1(%arg0: i32, %arg1: i32) -> (i32, i32, i32) {
    %c0_i32 = arith.constant 0 : i32
    %c0_i32_0 = arith.constant 0 : i32
    %c0_i32_1 = arith.constant 0 : i32
    return %arg0, %c0_i32, %c0_i32_0 : i32, i32, i32
  }
  func.func @transform_2(%arg0: i32, %arg1: i32) -> (i32, i32) {
    %c0_i32 = arith.constant 0 : i32
    %c0_i32_0 = arith.constant 0 : i32
    %c0_i32_1 = arith.constant 0 : i32
    return %c0_i32, %c0_i32_0 : i32, i32
  }
  func.func @transform_3(%arg0: i32, %arg1: i32) -> (i32, i32) {
    %c0_i32 = arith.constant 0 : i32
    %c0_i32_0 = arith.constant 0 : i32
    %c0_i32_1 = arith.constant 0 : i32
    return %c0_i32, %c0_i32_0 : i32, i32
  }
  func.func @transform_4(%arg0: i32, %arg1: i32) -> (i32, i32, i32) {
    %c0_i32 = arith.constant 0 : i32
    %c0_i32_0 = arith.constant 0 : i32
    %c0_i32_1 = arith.constant 0 : i32
    return %arg1, %c0_i32, %c0_i32_0 : i32, i32, i32
  }
  func.func @transform_5(%arg0: i32, %arg1: i32) -> (i32, i32, i32) {
    %c0_i32 = arith.constant 0 : i32
    %c0_i32_0 = arith.constant 0 : i32
    %c0_i32_1 = arith.constant 0 : i32
    return %arg1, %c0_i32, %c0_i32_0 : i32, i32, i32
  }
  func.func @transform_6(%arg0: i32, %arg1: i32) -> (i32, i32, i32) {
    %c0_i32 = arith.constant 0 : i32
    %c0_i32_0 = arith.constant 0 : i32
    %c0_i32_1 = arith.constant 0 : i32
    return %arg1, %c0_i32, %c0_i32_0 : i32, i32, i32
  }
  func.func @transform_7(%arg0: i32, %arg1: i32) -> (i32, i32, i32) {
    %c0_i32 = arith.constant 0 : i32
    %c0_i32_0 = arith.constant 0 : i32
    %c0_i32_1 = arith.constant 0 : i32
    return %arg1, %c0_i32, %c0_i32_0 : i32, i32, i32
  }
  func.func @transform_8(%arg0: i32, %arg1: i32) -> (i32, i32, i32) {
    %c0_i32 = arith.constant 0 : i32
    %c0_i32_0 = arith.constant 0 : i32
    %c0_i32_1 = arith.constant 0 : i32
    return %arg1, %c0_i32, %c0_i32_0 : i32, i32, i32
  }
  func.func @transform_9(%arg0: i32, %arg1: i32) -> (i32, i32, i32) {
    %c0_i32 = arith.constant 0 : i32
    %c0_i32_0 = arith.constant 0 : i32
    %c0_i32_1 = arith.constant 0 : i32
    return %arg1, %c0_i32, %c0_i32_0 : i32, i32, i32
  }
  func.func @transform_10(%arg0: i32, %arg1: i32) -> (i32, i32, i32) {
    %c0_i32 = arith.constant 0 : i32
    %c0_i32_0 = arith.constant 0 : i32
    %c0_i32_1 = arith.constant 0 : i32
    return %arg1, %c0_i32, %c0_i32_0 : i32, i32, i32
  }
  func.func @transform_11(%arg0: i32, %arg1: i32) -> (i32, i32, i32) {
    %c0_i32 = arith.constant 0 : i32
    %c0_i32_0 = arith.constant 0 : i32
    %c0_i32_1 = arith.constant 0 : i32
    return %arg1, %c0_i32, %c0_i32_0 : i32, i32, i32
  }
  func.func @transform_12(%arg0: i32, %arg1: i32) -> (i32, i32, i32) {
    %c0_i32 = arith.constant 0 : i32
    %c0_i32_0 = arith.constant 0 : i32
    %c0_i32_1 = arith.constant 0 : i32
    return %arg1, %c0_i32, %c0_i32_0 : i32, i32, i32
  }
  func.func @transform_13(%arg0: i32, %arg1: i32) -> (i32, i32, i32) {
    %c0_i32 = arith.constant 0 : i32
    %c0_i32_0 = arith.constant 0 : i32
    %c0_i32_1 = arith.constant 0 : i32
    return %arg1, %c0_i32, %c0_i32_0 : i32, i32, i32
  }
  func.func @transform_14(%arg0: i32, %arg1: i32) -> (i32, i32, i32) {
    %c0_i32 = arith.constant 0 : i32
    %c0_i32_0 = arith.constant 0 : i32
    %c0_i32_1 = arith.constant 0 : i32
    return %arg1, %c0_i32, %c0_i32_0 : i32, i32, i32
  }
  func.func @transform_15(%arg0: i32, %arg1: i32) -> (i32, i32, i32) {
    %c0_i32 = arith.constant 0 : i32
    %c0_i32_0 = arith.constant 0 : i32
    %c0_i32_1 = arith.constant 0 : i32
    return %arg1, %c0_i32, %c0_i32_0 : i32, i32, i32
  }
  func.func @transform_16(%arg0: i32, %arg1: i32) -> (i32, i32, i32) {
    %c0_i32 = arith.constant 0 : i32
    %c0_i32_0 = arith.constant 0 : i32
    %c0_i32_1 = arith.constant 0 : i32
    return %arg0, %c0_i32, %c0_i32_0 : i32, i32, i32
  }
}

module attributes {stable_mosaic.version = 11 : i64} {
  func.func @pooler_head_kernel(%arg0: i32, %arg1: memref<2x128xf32, #tpu.memory_space<vmem>>, %arg2: memref<128x128xbf16, #tpu.memory_space<vmem>>, %arg3: memref<1x128xf32, #tpu.memory_space<vmem>>, %arg4: memref<128x7xbf16, #tpu.memory_space<vmem>>, %arg5: memref<1x7xf32, #tpu.memory_space<vmem>>, %arg6: memref<2x7xf32, #tpu.memory_space<vmem>>) attributes {dimension_semantics = [#tpu.dimension_semantics<arbitrary>], iteration_bounds = array<i64: 1>, scalar_prefetch = 0 : i64, scratch_operands = 0 : i64, tpu.core_type = #tpu.core_type<tc>, window_params = [{pipeline_mode = #tpu.pipeline_mode<synchronous>, transform_indices = @transform_0, window_bounds = array<i64: 2, 128>}, {pipeline_mode = #tpu.pipeline_mode<synchronous>, transform_indices = @transform_1, window_bounds = array<i64: 128, 128>}, {pipeline_mode = #tpu.pipeline_mode<synchronous>, transform_indices = @transform_2, window_bounds = array<i64: 1, 128>}, {pipeline_mode = #tpu.pipeline_mode<synchronous>, transform_indices = @transform_3, window_bounds = array<i64: 128, 7>}, {pipeline_mode = #tpu.pipeline_mode<synchronous>, transform_indices = @transform_4, window_bounds = array<i64: 1, 7>}, {pipeline_mode = #tpu.pipeline_mode<synchronous>, transform_indices = @transform_5, window_bounds = array<i64: 2, 7>}]} {
    %c0 = arith.constant 0 : index
    %c0_0 = arith.constant 0 : index
    %0 = vector.load %arg1[%c0, %c0_0] : memref<2x128xf32, #tpu.memory_space<vmem>>, vector<2x128xf32>
    %1 = arith.truncf %0 : vector<2x128xf32> to vector<2x128xbf16>
    %c0_1 = arith.constant 0 : index
    %c0_2 = arith.constant 0 : index
    %2 = vector.load %arg2[%c0_1, %c0_2] : memref<128x128xbf16, #tpu.memory_space<vmem>>, vector<128x128xbf16>
    %cst = arith.constant dense<0.000000e+00> : vector<2x128xf32>
    %3 = tpu.matmul %1, %2, %cst {dimension_numbers = #tpu.dot_dimension_numbers<[1], [0], [0], [1], [0, 0, 1, 1], [], []>} : vector<2x128xbf16>, vector<128x128xbf16>, vector<2x128xf32> -> vector<2x128xf32>
    %c0_3 = arith.constant 0 : index
    %c0_4 = arith.constant 0 : index
    %4 = vector.load %arg3[%c0_3, %c0_4] : memref<1x128xf32, #tpu.memory_space<vmem>>, vector<1x128xf32>
    %5 = vector.broadcast %4 : vector<1x128xf32> to vector<2x128xf32>
    %6 = arith.addf %3, %5 : vector<2x128xf32>
    %7 = math.tanh %6 : vector<2x128xf32>
    %8 = arith.truncf %7 : vector<2x128xf32> to vector<2x128xbf16>
    %c0_5 = arith.constant 0 : index
    %c0_6 = arith.constant 0 : index
    %9 = vector.load %arg4[%c0_5, %c0_6] : memref<128x7xbf16, #tpu.memory_space<vmem>>, vector<128x7xbf16>
    %cst_7 = arith.constant dense<0.000000e+00> : vector<2x7xf32>
    %10 = tpu.matmul %8, %9, %cst_7 {dimension_numbers = #tpu.dot_dimension_numbers<[1], [0], [0], [1], [0, 0, 1, 1], [], []>} : vector<2x128xbf16>, vector<128x7xbf16>, vector<2x7xf32> -> vector<2x7xf32>
    %c0_8 = arith.constant 0 : index
    %c0_9 = arith.constant 0 : index
    %11 = vector.load %arg5[%c0_8, %c0_9] : memref<1x7xf32, #tpu.memory_space<vmem>>, vector<1x7xf32>
    %12 = vector.broadcast %11 : vector<1x7xf32> to vector<2x7xf32>
    %13 = arith.addf %10, %12 : vector<2x7xf32>
    %cst_10 = arith.constant dense<0xFF800000> : vector<2xf32>
    %14 = vector.multi_reduction <maximumf>, %13, %cst_10 [1] : vector<2x7xf32> to vector<2xf32>
    %15 = vector.shape_cast %14 : vector<2xf32> to vector<2x1xf32>
    %16 = vector.broadcast %15 : vector<2x1xf32> to vector<2x7xf32>
    %17 = arith.subf %13, %16 : vector<2x7xf32>
    %18 = math.exp %17 : vector<2x7xf32>
    %cst_11 = arith.constant dense<0.000000e+00> : vector<2xf32>
    %19 = vector.multi_reduction <add>, %18, %cst_11 [1] : vector<2x7xf32> to vector<2xf32>
    %20 = vector.shape_cast %19 : vector<2xf32> to vector<2x1xf32>
    %21 = vector.broadcast %20 : vector<2x1xf32> to vector<2x7xf32>
    %22 = arith.divf %18, %21 : vector<2x7xf32>
    %c0_12 = arith.constant 0 : index
    %c0_13 = arith.constant 0 : index
    %23 = vector.load %arg6[%c0_12, %c0_13] : memref<2x7xf32, #tpu.memory_space<vmem>>, vector<2x7xf32>
    tpu.vector_store %arg6[%c0_12, %c0_13], %22 {strides = array<i32>} : memref<2x7xf32, #tpu.memory_space<vmem>>, vector<2x7xf32>,
    return
  }
  func.func @transform_0(%arg0: i32) -> (i32, i32) {
    %c0_i32 = arith.constant 0 : i32
    %c0_i32_0 = arith.constant 0 : i32
    %c0_i32_1 = arith.constant 0 : i32
    return %c0_i32, %c0_i32_0 : i32, i32
  }
  func.func @transform_1(%arg0: i32) -> (i32, i32) {
    %c0_i32 = arith.constant 0 : i32
    %c0_i32_0 = arith.constant 0 : i32
    %c0_i32_1 = arith.constant 0 : i32
    return %c0_i32, %c0_i32_0 : i32, i32
  }
  func.func @transform_2(%arg0: i32) -> (i32, i32) {
    %c0_i32 = arith.constant 0 : i32
    %c0_i32_0 = arith.constant 0 : i32
    %c0_i32_1 = arith.constant 0 : i32
    return %c0_i32, %c0_i32_0 : i32, i32
  }
  func.func @transform_3(%arg0: i32) -> (i32, i32) {
    %c0_i32 = arith.constant 0 : i32
    %c0_i32_0 = arith.constant 0 : i32
    %c0_i32_1 = arith.constant 0 : i32
    return %c0_i32, %c0_i32_0 : i32, i32
  }
  func.func @transform_4(%arg0: i32) -> (i32, i32) {
    %c0_i32 = arith.constant 0 : i32
    %c0_i32_0 = arith.constant 0 : i32
    %c0_i32_1 = arith.constant 0 : i32
    return %c0_i32, %c0_i32_0 : i32, i32
  }
  func.func @transform_5(%arg0: i32) -> (i32, i32) {
    %c0_i32 = arith.constant 0 : i32
    %c0_i32_0 = arith.constant 0 : i32
    %c0_i32_1 = arith.constant 0 : i32
    return %c0_i32, %c0_i32_0 : i32, i32
  }
}

</mosaic_0001>

<bundles_post_ra>
// kernel: bert_large_forward.3
= control target key start
LH: loop header
LB: loop body
LE: loop exit
PB: predicated region body
PF: predicated region fallthrough
CT: control target
= control target key end

     0   :  { %v398_v1 = vmov 0.0   ;;  %vm399_vm0 = vmmov 0   ;;  %s494_s0 = inlined_call_operand.vmem [shape: f32[2,128], index: 0, kind: input, shape index: {}]   ;;  %s495_s1 = inlined_call_operand.vmem [shape: bf16[128,128], index: 1, kind: input, shape index: {}]   ;;  %s496_s2 = inlined_call_operand.vmem [shape: f32[1,128], index: 2, kind: input, shape index: {}]   ;;  %s497_s3 = inlined_call_operand.vmem [shape: bf16[128,7], index: 3, kind: input, shape index: {}]   ;;  %s498_s4 = inlined_call_operand.vmem [shape: f32[1,7], index: 4, kind: input, shape index: {}]   ;;  %s499_s5 = inlined_call_operand.hbm [shape: f32[2,7], index: 5, kind: output, shape index: {}]  }
   0x1   :  { %v354_v0 = vld [vmem:[%s495_s1 + $0x38] sm:$0xff]   ;;  %311 = vmatprep.subr.bf16.mxu0 %v398_v1  ;;  %331 = vmatprep.subr.bf16.mxu1 %v398_v1  ;;  %v355_v2 = vld [vmem:[%s495_s1 + $0x30] sm:$0xff]   ;;  %v356_v3 = vld [vmem:[%s495_s1 + $0x28] sm:$0xff]  }
   0x2   :  { %312 = vmatpush3.bf16.msra.mxu0 %v354_v0  ;;  %327 = vmatprep.mubr.msk.bf16.mxu0 %vm399_vm0, %v398_v1  ;;  %v362_v4 = vld [vmem:[%s497_s3 + $0x38] sm:$0xff]   ;;  %v357_v5 = vld [vmem:[%s495_s1 + $0x20] sm:$0xff]   ;;  %v363_v6 = vld [vmem:[%s497_s3 + $0x30] sm:$0xff]  }
   0x3   :  { %313 = vmatprep.subr.bf16.mxu0 %v398_v1  ;;  %347 = vmatprep.mubr.msk.bf16.mxu1 %vm399_vm0, %v398_v1  ;;  %v358_v7 = vld [vmem:[%s495_s1 + $0x18] sm:$0xff]   ;;  %v364_v8 = vld [vmem:[%s497_s3 + $0x28] sm:$0xff]  }
   0x4   :  { %332 = vmatpush3.bf16.msra.mxu1 %v362_v4 }
   0x5   :  { %333 = vmatprep.subr.bf16.mxu1 %v398_v1 }
   0x6   :  { %314 = vmatpush3.bf16.msra.mxu0 %v355_v2 }
   0x7   :  { %315 = vmatprep.subr.bf16.mxu0 %v398_v1 }
   0x8   :  { %334 = vmatpush3.bf16.msra.mxu1 %v363_v6 }
   0xa   :  { %316 = vmatpush3.bf16.msra.mxu0 %v356_v3 }
   0xb   :  { %317 = vmatprep.subr.bf16.mxu0 %v398_v1 }
   0xe   :  { %318 = vmatpush3.bf16.msra.mxu0 %v357_v5 }
   0xf   :  { %319 = vmatprep.subr.bf16.mxu0 %v398_v1 }
  0x10   :  { %10 = vsyncpa [#allocation3], 0  ;;  %335 = vmatprep.subr.bf16.mxu1 %v398_v1  ;;  %v359_v9 = vld [vmem:[%s495_s1 + $0x10] sm:$0xff]   ;;  %v360_v10 = vld [vmem:[%s495_s1 + $0x8] sm:$0xff]   ;;  %vm248_vm1 = vcmask 50176  }
  0x11   :  { %336 = vmatpush3.bf16.msra.mxu1 %v364_v8  ;;  %v361_v11 = vld [vmem:[%s495_s1] sm:$0xff]   ;;  %v366_v15 = vld [vmem:[%s497_s3 + $0x18] sm:$0xff]   ;;  %v367_v16 = vld [vmem:[%s497_s3 + $0x10] sm:$0xff]  }
  0x12   :  { %320 = vmatpush3.bf16.msra.mxu0 %v358_v7  ;;  %337 = vmatprep.subr.bf16.mxu1 %v398_v1  ;;  %v22_v12 = vld [vmem:[%s494_s0] sm:$0x3]  ;;  %v368_v17 = vld [vmem:[%s497_s3 + $0x8] sm:$0xff]  }
  0x13   :  { %321 = vmatprep.subr.bf16.mxu0 %v398_v1  ;;  %v23_v13 = vpack.c.bf16 %v22_v12, %v22_v12  ;;  %v365_v14 = vld [vmem:[%s497_s3 + $0x20] sm:$0xff]  }
  0x14   :  { %v369_v18 = vld [vmem:[%s497_s3] sm:$0xff]  }
  0x15   :  { %338 = vmatpush3.bf16.msra.mxu1 %v365_v14  ;;  %v275_v19 = vld [vmem:[%s496_s2] ss:$0 sm:$0xff]  ;;  %s400_s2 = smov [#allocation2]  }
  0x16   :  { %322 = vmatpush3.bf16.msra.mxu0 %v359_v9  ;;  %339 = vmatprep.subr.bf16.mxu1 %v398_v1  ;;  %v284_v27 = vld [vmem:[%s498_s4] ss:$0 sm:$0xff]  ;;  %s267_s3 = sshll.u32 %s400_s2, 4  ;;  %s268_s3 = int_to_ptr.vmem [resolvable:$true] %s267_s3 }
  0x17   :  { %323 = vmatprep.subr.bf16.mxu0 %v398_v1  ;;  %s376_s4 = scalar_lea.vmem %s268_s3, 32  ;;  %p381_p1 = scmp.lt.s32.totalorder %s268_s3, %s268_s3 }
  0x18   :  { %p377_p0 = scmp.ne.s32.totalorder %s268_s3, %s376_s4  ;;  %p382_p2 = scmp.lt.s32.totalorder %s376_s4, %s376_s4 }
  0x19   :  { %340 = vmatpush3.bf16.msra.mxu1 %v366_v15 }
  0x1a   :  { %324 = vmatpush3.bf16.msra.mxu0 %v360_v10  ;;  %341 = vmatprep.subr.bf16.mxu1 %v398_v1  ;;  %p383_p3 = por %p382_p2, %p381_p1 }
  0x1b   :  { %325 = vmatprep.subr.bf16.mxu0 %v398_v1 }
  0x1c   :  { %p384_p4 = pnand %p383_p3, %p377_p0 }
  0x1d   :  { %342 = vmatpush3.bf16.msra.mxu1 %v367_v16 }
  0x1e   :  { %326 = vmatpush3.bf16.msra.mxu0 %v361_v11  ;;  %343 = vmatprep.subr.bf16.mxu1 %v398_v1 }
  0x21   :  { %328 = vmatmul.mubr.bf16.vlgmr.msra.gmra.mxu0 %v23_v13  ;;  %344 = vmatpush3.bf16.msra.mxu1 %v368_v17 }
  0x22   :  { %345 = vmatprep.subr.bf16.mxu1 %v398_v1 }
  0x25   :  { %346 = vmatpush3.bf16.msra.mxu1 %v369_v18 }
  0xe1   :  { %v129_v20 = vpop.f32.mrf.mxu0 }
  0xe2   :  { %v130_v21 = vadd.f32 %v275_v19, %v129_v20 }
  0xe3   :  { %v329_v22 = vpop.f32.mrf.mxu0 }
  0xe4   :  { %370 = vtanh.f32 %v130_v21 }
  0xe5   :  { %v132_v23 = vpop.f32.mrf.mxu0 }
  0xe7   :  { %v330_v24 = vpop.f32.mrf.mxu0 }
  0xf1   :  { %v371_v25 = vpop.eup %370 }
  0xf2   :  { %v136_v26 = vpack.c.bf16 %v371_v25, %v371_v25 }
  0xf4   :  { %348 = vmatmul.mubr.bf16.vlgmr.msra.gmra.mxu1 %v136_v26 }
 0x1b4   :  { %v242_v28 = vpop.f32.mrf.mxu1 }
 0x1b5   :  { %v243_v29 = vadd.f32 %v284_v27, %v242_v28 }
 0x1b6   :  { %v349_v30 = vpop.f32.mrf.mxu1 }
 0x1b7   :  { %v249_v31 = vsel %vm248_vm1, %v243_v29, -inf }
 0x1b8   :  { %250 = vmax.xlane.f32.xlu0 %v249_v31  ;;  %v245_v32 = vpop.f32.mrf.mxu1 }
 0x1ba   :  { %v350_v33 = vpop.f32.mrf.mxu1 }
 0x241   :  { %v251_v34 = vpop.xlane.xlu0 %250 }
 0x242   :  { %v252_v35 = vsub.f32 %v243_v29, %v251_v34 }
 0x244   :  { %v253_v36 = vmul.f32 1.442695, %v252_v35 }
 0x246   :  { %372 = vpow2.f32 %v253_v36 }
 0x253   :  { %v373_v37 = vpop.eup %372 }
 0x254   :  { %v255_v38 = vsel %vm248_vm1, %v373_v37, 0.0 }
 0x255   :  { %256 = vadd.xlane.f32.xlu0 %v255_v38 }
 0x2de   :  { %v257_v39 = vpop.xlane.xlu0 %256 }
 0x2df   :  { %374 = vrcp.f32 %v257_v39 }
 0x2ec   :  { %v375_v40 = vpop.eup %374 }
 0x2ed   :  { %v259_v41 = vmul.f32 %v375_v40, %v373_v37 }
 0x2ef   :  { %260 = vst.msk [vmem:[#allocation2] sm:$0x3] %vm248_vm1, %v259_v41 }
 0x2f0   :  { %387 = shalt.err (!%p384_p4)
}
 0x2f1   :  { %270 = dma.vmem_to_hbm [thread:$0]  %s268_s3, 32, %s499_s5, [#allocation3]  }
 0x2f2   :  { %396 = dma.done.wait [#allocation3], 32  }
 0x2f3   :  { %397 = vsyncadd [#allocation3], 4294967264 }
 0x2f4   :  { %274 = vsyncpa [#allocation3], 1 }

// kernel: bert_large_forward.2
= control target key start
LH: loop header
LB: loop body
LE: loop exit
PB: predicated region body
PF: predicated region fallthrough
CT: control target
= control target key end

     0   :  { %s3941_s0 = inlined_call_operand.vmem [shape: f32[2,8,128], index: 0, kind: input, shape index: {}]   ;;  %s3942_s1 = inlined_call_operand.vmem [shape: f32[2,1,8], index: 1, kind: input, shape index: {}]   ;;  %s3943_s2 = inlined_call_operand.vmem [shape: f32[1,128], index: 2, kind: input, shape index: {}]   ;;  %s3944_s3 = inlined_call_operand.vmem [shape: f32[1,128], index: 3, kind: input, shape index: {}]   ;;  %s3945_s4 = inlined_call_operand.hbm [shape: bf16[2,128,384], index: 4, kind: input, shape index: {}]   ;;  %s3946_s5 = inlined_call_operand.vmem [shape: f32[2,1,384], index: 5, kind: input, shape index: {}]   ;;  %s3947_s6 = inlined_call_operand.vmem [shape: bf16[2,128,128], index: 6, kind: input, shape index: {}]   ;;  %s3948_s7 = inlined_call_operand.vmem [shape: f32[2,1,128], index: 7, kind: input, shape index: {}]   ;;  %s3949_s8 = inlined_call_operand.vmem [shape: f32[2,1,128], index: 8, kind: input, shape index: {}]   ;;  %s3950_s9 = inlined_call_operand.vmem [shape: f32[2,1,128], index: 9, kind: input, shape index: {}]   ;;  %s3951_s10 = inlined_call_operand.hbm [shape: bf16[2,128,512], index: 10, kind: input, shape index: {}]   ;;  %s3952_s11 = inlined_call_operand.vmem [shape: f32[2,1,512], index: 11, kind: input, shape index: {}]   ;;  %s3953_s12 = inlined_call_operand.hbm [shape: bf16[2,512,128], index: 12, kind: input, shape index: {}]   ;;  %s3954_s13 = inlined_call_operand.vmem [shape: f32[2,1,128], index: 13, kind: input, shape index: {}]   ;;  %s3955_s14 = inlined_call_operand.vmem [shape: f32[2,1,128], index: 14, kind: input, shape index: {}]   ;;  %s3956_s15 = inlined_call_operand.vmem [shape: f32[2,1,128], index: 15, kind: input, shape index: {}]   ;;  %s3957_s16 = inlined_call_operand.vmem [shape: f32[2,8,128], index: 16, kind: output, shape index: {}]  }
   0x1   :  { %3966 = sst [smem:[#allocation18_spill]] %s3941_s0 }
   0x2   :  { %3967 = sst [smem:[#allocation19_spill]] %s3943_s2 }
   0x3   :  { %3968 = sst [smem:[#allocation20_spill]] %s3944_s3 }
   0x4   :  { %3969 = sst [smem:[#allocation21_spill]] %s3945_s4 }
   0x5   :  { %3970 = sst [smem:[#allocation22_spill]] %s3946_s5 }
   0x6   :  { %3971 = sst [smem:[#allocation23_spill]] %s3947_s6 }
   0x7   :  { %3972 = sst [smem:[#allocation24_spill]] %s3948_s7 }
   0x8   :  { %3973 = sst [smem:[#allocation25_spill]] %s3949_s8 }
   0x9   :  { %3974 = sst [smem:[#allocation26_spill]] %s3950_s9 }
   0xa   :  { %3975 = sst [smem:[#allocation27_spill]] %s3951_s10 }
   0xb   :  { %3976 = sst [smem:[#allocation28_spill]] %s3952_s11 }
   0xc   :  { %3977 = sst [smem:[#allocation29_spill]] %s3953_s12 }
   0xd   :  { %3978 = sst [smem:[#allocation30_spill]] %s3954_s13 }
   0xe   :  { %3979 = sst [smem:[#allocation31_spill]] %s3955_s14 }
   0xf   :  { %3980 = sst [smem:[#allocation32_spill]] %s3956_s15 }
  0x10   :  { %3981 = sst [smem:[#allocation33_spill]] %s3957_s16 }
  0x11   :  { %21 = vsyncpa [#allocation3], 0 }
  0x12   :  { %23 = vsyncpa [#allocation3 + $0x1], 0 }
  0x13   :  { %24 = vsyncpa [#allocation5], 0 }
  0x14   :  { %26 = vsyncpa [#allocation5 + $0x1], 0  ;;  %s3439_s21 = smov 0   ;;  %s3441_s22 = smov 0  }
  0x15   :  { %s3443_s23 = smov 0   ;;  %s3445_s24 = smov 0  }
  0x16   :  { %s3447_s25 = smov 0   ;;  %s3449_s26 = smov 0  }
  0x17   :  { %s3451_s27 = smov 0   ;;  %s3453_s28 = smov 0  }
  0x18 LB: > { %3982 = sst [smem:[#allocation9_spill]] %s3313_s22  ;;  %s3960_s29 = sadd.s32 4294967295, %s3337_s28   ;;  %s3337_s28 = sphi %s3453_s28, %s32_s28   ;;  %s3333_s27 = sphi %s3451_s27, %s4029_s27   ;;  %s3329_s26 = sphi %s3449_s26, %s4028_s26   ;;  %s3325_s25 = sphi %s3447_s25, %s4027_s25   ;;  %s3321_s24 = sphi %s3445_s24, %s4026_s24   ;;  %s3317_s23 = sphi %s3443_s23, %s4025_s23   ;;  %s3313_s22 = sphi %s3441_s22, %s4024_s22   ;;  %s3309_s21 = sphi %s3439_s21, %s4023_s21  }
  0x19   : > { %3983 = sst [smem:[#allocation10_spill]] %s3317_s23  ;;  %s41_s30 = sadd.s32 1, %s3329_s26 }
  0x1a   : > { %3984 = sst [smem:[#allocation11_spill]] %s3329_s26  ;;  %p42_p0 = scmp.ge.s32.totalorder %s41_s30, 2 }
  0x1b   : > { %3985 = sst [smem:[#allocation12_spill]] %s3333_s27  ;;  %s44_s0 = sadd.s32 1, %s3333_s27 }
  0x1c   : > { %3986 = sst [smem:[#allocation13_spill]] %s3337_s28  ;;  %s145_s17 = sadd.s32 1, %s3317_s23 }
  0x1d   : > { %p152_p1 = scmp.ne.s32.totalorder %s3317_s23, %s3313_s22  ;;  %s4031_s30 = smov (%p42_p0, %s41_s30), 0 }
  0x1e   : > { %3987 = sst [smem:[#allocation14_spill]] %s4031_s30  ;;  %s4033_s0 = smov (!%p42_p0, %s44_s0), %s3333_s27 }
  0x1f   : > { %s142_s18 = ssub.s32 %s3329_s26, %s4031_s30  ;;  %p153_p2 = scmp.eq.s32.totalorder %s3337_s28, 0 }
  0x20   : > { %p46_p3 = scmp.ge.s32.totalorder %s4033_s0, 2  ;;  %p143_p4 = scmp.eq.s32.totalorder %s142_s18, 0 }
  0x21   : > { %p154_p5 = por %p153_p2, %p152_p1  ;;  %p158_p6 = scmp.ne.s32.totalorder %s3313_s22, %s3309_s21 }
  0x22   : > { %s4035_s0 = smov (%p46_p3, %s4033_s0), 0  ;;  %p159_p7 = scmp.eq.s32.totalorder %s3960_s29, 0 }
  0x23   : > { %3988 = sst [smem:[#allocation15_spill]] %s4035_s0  ;;  %p2956_p8 = scmp.lt.s32.totalorder %s3337_s28, 4 }
  0x24   : > { %s3493_s19 = scalar_select %p143_p4, %s3317_s23, %s145_s17  }
  0x25   : > { %s3499_s20 = sand.u32 1, %s3317_s23   ;;  %p3501_p9 = por %p159_p7, %p158_p6 }
  0x26   : > { %3989 = sst [smem:[#allocation16_spill]] %s3493_s19  ;;  %s567_s30 = sand.u32 1, %s3337_s28  }
  0x27   : > { %p3506_p10 = pnand %p2956_p8, %p154_p5  ;;  %s2637_s21 = sshll.u32 %s3499_s20, 8 }
  0x28   : > { %s2767_s17 = sshll.u32 %s3329_s26, 12  ;;  %s3992_s10 = sld [smem:[#allocation27_spill]] }
  0x29   : > { %s571_s19 = scalar_lea.vmem [#allocation4], %s2637_s21  ;;  %s3515_s2 = scalar_lea.sflag [#allocation5], %s567_s30 }
  0x2a   : > { %s578_s23 = sshll.u32 %s571_s19, 4  ;;  %p3185_p11 = pneg %p3506_p10  ;;  %s579_s23 = int_to_ptr.vmem [resolvable:$true] %s578_s23 }
  0x2b   : > { %s3196_s16 = scalar_lea.vmem %s579_s23, 4096  ;;  %s3339_s15 = smov [#allocation4]  }
  0x2c   : > { %p3197_p12 = scmp.ne.s32.totalorder %s579_s23, %s3196_s16  ;;  %s3201_s14 = sshll.u32 %s3339_s15, 4  ;;  %s3202_s14 = int_to_ptr.vmem [resolvable:$false] %s3201_s14 }
  0x2d   : > { %s3203_s11 = scalar_lea.vmem %s3202_s14, 8192  ;;  %p3204_p1 = scmp.lt.s32.totalorder %s579_s23, %s3202_s14 }
  0x2e   : > { %s577_s29 = scalar_lea.hbm %s3992_s10, %s2767_s17  ;;  %p3199_p13 = pnand %p3197_p12, %p3185_p11 }
  0x2f   : > { %p3205_p2 = scmp.lt.s32.totalorder %s3203_s11, %s3196_s16 }
  0x30   : > { %p3200_p0 = pneg %p3199_p13 }
  0x31   : > { %p3206_p3 = por %p3205_p2, %p3204_p1 }
  0x33   : > { %p3207_p4 = pnand %p3206_p3, %p3200_p0 }
  0x35   : > { %3210 = shalt.err (!%p3207_p4)
}
  0x36   : > { %s3340_s0 = smov 256   ;;  %s3341_s30 = smov 16  }
  0x37   : > { %2952 = dma.hbm_to_vmem [thread:$0]  (!%p3506_p10), %s577_s29, 4096, %s579_s23, %s3515_s2, %s3340_s0, %s3340_s0, %s3341_s30  }
  0x38   : > { %s3993_s12 = sld [smem:[#allocation29_spill]]  ;;  %s599_s11 = scalar_lea.vmem [#allocation6], %s2637_s21 }
  0x39   : > { %s606_s14 = sshll.u32 %s599_s11, 4  ;;  %p2643_p5 = scmp.ge.s32.totalorder %s3337_s28, 1  ;;  %s3530_s14 = int_to_ptr.vmem [resolvable:$true] %s606_s14 }
  0x3a   : > { %p632_p6 = scmp.lt.s32.totalorder %s3337_s28, 5  ;;  %s2936_s10 = smul.u32 192, %s3499_s20 }
  0x3b   : > { %s2937_s13 = smul.u32 3072, %s3329_s26  ;;  %s3995_s4 = sld [smem:[#allocation21_spill]] }
  0x3c   : > { %p3534_p7 = pnand %p2643_p5, %p632_p6  ;;  %s517_s0 = scalar_lea.vmem [#allocation2], %s2936_s10 }
  0x3d   : > { %s514_s30 = scalar_lea.sflag [#allocation3], %s3499_s20  ;;  %s3342_s19 = smov [#allocation2]  }
  0x3e   : > { %s3528_s18 = scalar_lea.hbm %s3993_s12, %s2767_s17  ;;  %s524_s17 = sshll.u32 %s517_s0, 4  ;;  %s525_s17 = int_to_ptr.vmem [resolvable:$true] %s524_s17 }
  0x3f   : > { %s3224_s21 = scalar_lea.vmem %s525_s17, 3072  ;;  %s3229_s15 = sshll.u32 %s3342_s19, 4  ;;  %s3230_s15 = int_to_ptr.vmem [resolvable:$false] %s3229_s15 }
  0x40   : > { %p3225_p8 = scmp.ne.s32.totalorder %s525_s17, %s3224_s21  ;;  %s3231_s11 = scalar_lea.vmem %s3230_s15, 6144 }
  0x41   : > { %s523_s29 = scalar_lea.hbm %s3995_s4, %s2937_s13  ;;  %p3232_p0 = scmp.lt.s32.totalorder %s525_s17, %s3230_s15 }
  0x42   : > { %p3227_p12 = pnand %p3225_p8, %p3185_p11  ;;  %p3233_p1 = scmp.lt.s32.totalorder %s3231_s11, %s3224_s21 }
  0x44   : > { %p3228_p13 = pneg %p3227_p12  ;;  %p3234_p2 = por %p3233_p1, %p3232_p0 }
  0x46   : > { %p3235_p3 = pnand %p3234_p2, %p3228_p13 }
  0x48   : > { %3238 = shalt.err (!%p3235_p3)
}
  0x49   : > { %s3343_s9 = smov 192   ;;  %s3344_s10 = smov 12  }
  0x4a   : > { %2949 = dma.hbm_to_vmem [thread:$0]  (!%p3506_p10), %s523_s29, 3072, %s525_s17, %s514_s30, %s3343_s9, %s3343_s9, %s3344_s10  }
  0x4b   : > { %s3252_s13 = scalar_lea.vmem %s3530_s14, 4096  ;;  %s3345_s20 = smov [#allocation6]  }
  0x4c   : > { %p3253_p4 = scmp.ne.s32.totalorder %s3530_s14, %s3252_s13  ;;  %s3257_s23 = sshll.u32 %s3345_s20, 4  ;;  %s3258_s23 = int_to_ptr.vmem [resolvable:$false] %s3257_s23 }
  0x4d   : > { %s3259_s0 = scalar_lea.vmem %s3258_s23, 8192  ;;  %p3260_p8 = scmp.lt.s32.totalorder %s3530_s14, %s3258_s23 }
  0x4e   : > { %p3255_p5 = pnand %p3253_p4, %p3185_p11  ;;  %p3261_p12 = scmp.lt.s32.totalorder %s3259_s0, %s3252_s13 }
  0x50   : > { %p3256_p6 = pneg %p3255_p5  ;;  %p3262_p13 = por %p3261_p12, %p3260_p8 }
  0x52   : > { %p3263_p0 = pnand %p3262_p13, %p3256_p6 }
  0x54   : > { %3266 = shalt.err (!%p3263_p0)
}
  0x55   : > { %s3346_s21 = smov 64   ;;  %s3347_s29 = smov 4  }
  0x56   : > { %2955 = dma.hbm_to_vmem [thread:$0]  (!%p3506_p10), %s3528_s18, 4096, %s3530_s14, %s3515_s2, %s3346_s21, %s3346_s21, %s3347_s29  }
  0x57   : > { %636 = sbr.rel (%p3534_p7) target bundleno = 3267 (0xcc3), region = 84 }
  0x5c   : > { %s3563_s17 = sand.u32 1, %s3313_s22  }
  0x5d   : > { %s2938_s30 = smul.u32 192, %s3563_s17  ;;  %s639_s19 = scalar_lea.sflag [#allocation3], %s3563_s17 }
  0x5f   : > { %s3567_s15 = scalar_lea.vmem [#allocation2], %s2938_s30 }
  0x60   : > { %3300 = dma.done.wait (%p3501_p9), %s639_s19, 3072  }
  0x61   : > { %3302 = vsyncadd (%p3501_p9), %s639_s19, 4294964224  ;;  %s3996_s2 = sadd.s32 4294967295, %s3337_s28   ;;  %s2644_s18 = sshll.u32 %s3563_s17, 8 }
  0x62   : > { %s647_s27 = sand.u32 1, %s3996_s2   ;;  %s3576_s16 = scalar_lea.vmem [#allocation4], %s2644_s18 }
  0x63   : > { %s648_s14 = scalar_lea.sflag [#allocation5], %s647_s27  ;;  %3997 = sst [smem:[#allocation17_spill]] %s3576_s16 }
  0x64   : > { %3304 = dma.done.wait (%p3501_p9), %s648_s14, 8192  }
  0x65   : > { %3306 = vsyncadd (%p3501_p9), %s648_s14, 4294959104  ;;  %p756_p10 = scmp.lt.s32.totalorder %s3325_s25, 1  ;;  %p763_p11 = scmp.lt.s32.totalorder %s3321_s24, 1 }
  0x66   : > { %s3998_s0 = sld [smem:[#allocation18_spill]]  ;;  %s3645_s2 = scalar_lea.vmem [#allocation6], %s2644_s18 }
  0x67   : > { %s4037_s25 = smov (!%p756_p10, %s3325_s25), 1  ;;  %s4000_s5 = sld [smem:[#allocation22_spill]] }
  0x68   : > { %s3588_s11 = scalar_select %p763_p11, %s3321_s24, 1 }
  0x69   : > { %s2646_s3 = sshll.u32 %s4037_s25, 3  ;;  %s4001_s6 = sld [smem:[#allocation23_spill]] }
  0x6a   : > { %s2939_s29 = smul.u32 3, %s3588_s11  ;;  %s2769_s17 = sshll.u32 %s3588_s11, 6 }
  0x6b   : > { %s2649_s30 = sshll.u32 %s3588_s11, 2  ;;  %s4004_s7 = sld [smem:[#allocation30_spill]] }
  0x6c   : > { %s759_s21 = scalar_lea.vmem %s3998_s0, %s2646_s3  ;;  %s4007_s20 = sld [smem:[#allocation32_spill]] }
  0x6d   : > { %s3607_s4 = scalar_lea.vmem %s4000_s5, %s2939_s29  ;;  %s4005_s5 = sld [smem:[#allocation28_spill]] }
  0x6e   : > { %s4008_s0 = sld [smem:[#allocation33_spill]]  ;;  %p2651_p9 = scmp.ne.s32.totalorder %s3321_s24, 0 }
  0x6f   : > { %s3612_s9 = scalar_lea.vmem %s4001_s6, %s2769_s17  ;;  %s4006_s17 = sld [smem:[#allocation31_spill]] }
  0x70   : > { %s4009_s18 = sld [smem:[#allocation19_spill]] (!%p2651_p9) }
  0x71   : > { %s787_s27 = scalar_lea.vmem %s4004_s7, %s3588_s11  ;;  %802 = sbr.rel (%p2651_p9) target bundleno = 426 (0x1aa), region = 100 }
  0x72   : > { %s793_s8 = scalar_lea.vmem %s4007_s20, %s3588_s11 }
  0x73   : > { %s3630_s16 = scalar_lea.vmem %s4005_s5, %s2649_s30 }
  0x74   : > { %s3643_s28 = scalar_lea.vmem %s4008_s0, %s2646_s3 }
  0x75   : > { %s790_s6 = scalar_lea.vmem %s4006_s17, %s3588_s11 }
  0x76   : > { %v803_v0 = vld [vmem:[%s759_s21] sm:$0xff]  ;;  %s4010_s21 = sld [smem:[#allocation20_spill]] }
  0x77   : > { %806 = vadd.xlane.f32.xlu0 %v803_v0  ;;  %v2652_v9 = vld [vmem:[%s4009_s18] ss:$0 sm:$0xff] }
  0x7c   : > { %v2653_v11 = vld [vmem:[%s4010_s21] ss:$0 sm:$0xff] }
 0x100   : > { %v807_v1 = vpop.xlane.xlu0 %806 }
 0x101   : > { %v809_v2 = vmul.f32 0.0078125, %v807_v1 }
 0x103   : > { %v810_v3 = vsub.f32 %v803_v0, %v809_v2 }
 0x105   : > { %v811_v4 = vmul.f32 %v810_v3, %v810_v3 }
 0x107   : > { %812 = vadd.xlane.f32.xlu0 %v811_v4 }
 0x190   : > { %v813_v5 = vpop.xlane.xlu0 %812 }
 0x191   : > { %v814_v6 = vmul.f32 0.0078125, %v813_v5 }
 0x193   : > { %v815_v7 = vadd.f32 1e-12, %v814_v6 }
 0x195   : > { %3033 = vrsqrt.f32 %v815_v7 }
 0x1a2   : > { %v3034_v8 = vpop.eup %3033 }
 0x1a3   : > { %v817_v10 = vmul.f32 %v3034_v8, %v810_v3 }
 0x1a5   : > { %v824_v12 = vmul.f32 %v2652_v9, %v817_v10 }
 0x1a7   : > { %v831_v13 = vadd.f32 %v2653_v11, %v824_v12 }
 0x1a9   : > { %832 = vst [vmem:[%s3643_s28] sm:$0xff] %v831_v13 }
 0x1aa PF: > { %v3035_v14 = vld [vmem:[%s3567_s15 + $0xac] ss:$12 sps:$4 sm:$0xff]   ;;  %v3037_v15 = vld [vmem:[%s3567_s15 + $0xa8] ss:$12 sps:$4 sm:$0xff]   ;;  %v3348_v16 = vmov 0   ;;  %v3349_v17 = vmov 0.0   ;;  %v870_v42 = vlaneseq  ;;  %s4011_s29 = scalar_lea.vmem %s3942_s1, %s4037_s25 }
 0x1ab   : > { %1045 = vmatprep.mubr.bf16.mxu0 %v3348_v16  ;;  %2848 = vmatprep.subr.bf16.mxu1 %v3349_v17  ;;  %v3038_v18 = vld [vmem:[%s3567_s15 + $0x94] ss:$12 sps:$4 sm:$0xff]   ;;  %v3040_v19 = vld [vmem:[%s3567_s15 + $0x90] ss:$12 sps:$4 sm:$0xff]   ;;  %v3043_v21 = vld [vmem:[%s3567_s15 + $0x78] ss:$12 sps:$4 sm:$0xff]  }
 0x1ac   : > { %1013 = vmatprep.subr.bf16.mxu0 %v3035_v14  ;;  %v3041_v20 = vld [vmem:[%s3567_s15 + $0x7c] ss:$12 sps:$4 sm:$0xff]   ;;  %v3044_v22 = vld [vmem:[%s3567_s15 + $0x64] ss:$12 sps:$4 sm:$0xff]   ;;  %v3046_v23 = vld [vmem:[%s3567_s15 + $0x60] ss:$12 sps:$4 sm:$0xff]  }
 0x1ad   : > { %1014 = vmatpush1.bf16.msra.mxu0 %v3037_v15  ;;  %v3059_v24 = vld [vmem:[%s3567_s15 + $0xb0] ss:$12 sps:$4 sm:$0xff]   ;;  %v3047_v25 = vld [vmem:[%s3567_s15 + $0x4c] ss:$12 sps:$4 sm:$0xff]   ;;  %v3049_v27 = vld [vmem:[%s3567_s15 + $0x48] ss:$12 sps:$4 sm:$0xff]  }
 0x1ae   : > { %1015 = vmatprep.subr.bf16.mxu0 %v3038_v18  ;;  %2849 = vmatpush3.bf16.msra.mxu1 %v3059_v24  ;;  %v3060_v26 = vld [vmem:[%s3567_s15 + $0x98] ss:$12 sps:$4 sm:$0xff]   ;;  %v3050_v28 = vld [vmem:[%s3567_s15 + $0x34] ss:$12 sps:$4 sm:$0xff]   ;;  %v3052_v29 = vld [vmem:[%s3567_s15 + $0x30] ss:$12 sps:$4 sm:$0xff]  }
 0x1af   : > { %2850 = vmatprep.subr.bf16.mxu1 %v3349_v17  ;;  %v3061_v30 = vld [vmem:[%s3567_s15 + $0x80] ss:$12 sps:$4 sm:$0xff]   ;;  %v3053_v31 = vld [vmem:[%s3567_s15 + $0x1c] ss:$12 sps:$4 sm:$0xff]   ;;  %v3055_v33 = vld [vmem:[%s3567_s15 + $0x18] ss:$12 sps:$4 sm:$0xff]  }
 0x1b0   : > { %v3062_v32 = vld [vmem:[%s3567_s15 + $0x68] ss:$12 sps:$4 sm:$0xff]   ;;  %v3056_v34 = vld [vmem:[%s3567_s15 + $0x4] ss:$12 sps:$4 sm:$0xff]   ;;  %v3058_v36 = vld [vmem:[%s3567_s15] ss:$12 sps:$4 sm:$0xff]  }
 0x1b1   : > { %1016 = vmatpush1.bf16.msra.mxu0 %v3040_v19  ;;  %v3063_v35 = vld [vmem:[%s3567_s15 + $0x50] ss:$12 sps:$4 sm:$0xff]   ;;  %v3682_v37 = vld [vmem:[%s3643_s28] sm:$0xff]  ;;  %v3066_v41 = vld [vmem:[%s3567_s15 + $0x8] ss:$12 sps:$4 sm:$0xff]   ;;  %vm3350_vm0 = vmmov 0  }
 0x1b2   : > { %1017 = vmatprep.subr.bf16.mxu0 %v3041_v20  ;;  %2851 = vmatpush3.bf16.msra.mxu1 %v3060_v26  ;;  %v3064_v38 = vld [vmem:[%s3567_s15 + $0x38] ss:$12 sps:$4 sm:$0xff]   ;;  %v835_v39 = vpack.c.bf16 %v3682_v37, %v3682_v37  ;;  %v3065_v40 = vld [vmem:[%s3567_s15 + $0x20] ss:$12 sps:$4 sm:$0xff]   ;;  %v3701_v43 = vshrl.u32 %v870_v42, 7  ;;  %vm1097_vm1 = vcmask 261120  }
 0x1b3   : > { %2852 = vmatprep.subr.bf16.mxu1 %v3349_v17  ;;  %2864 = vmatprep.mubr.msk.bf16.mxu1 %vm3350_vm0, %v3349_v17  ;;  %v868_v46 = vld [vmem:[%s3607_s4] sm:$0x7]  ;;  %s3351_s15 = smov 96   ;;  %s3352_s4 = smov 64   ;;  %vm1168_vm2 = vcmask 1043456   ;;  %vm1152_vm3 = vcmask 64512  }
 0x1b4   : > { %v876_v44 = vsub.s32 1, %v3701_v43  ;;  %v872_v45 = vsub.s32 0, %v3701_v43  ;;  %s3353_s20 = smov 32   ;;  %v880_v58 = vsub.s32 2, %v3701_v43  ;;  %v3733_v4 = vld [vmem:[%s4011_s29] ss:$0 sm:$0xff] }
 0x1b5   : > { %1018 = vmatpush1.bf16.msra.mxu0 %v3043_v21  ;;  %vm1564_vm4 = vcmask 523264   ;;  %vm1566_vm5 = vcmask 785408   ;;  %s4012_s25 = sld [smem:[#allocation17_spill]] }
 0x1b6   : > { %1019 = vmatprep.subr.bf16.mxu0 %v3044_v22  ;;  %2853 = vmatpush3.bf16.msra.mxu1 %v3061_v30  ;;  %v877_v47 = vrot.slane %v868_v46, %v876_v44  ;;  %v873_v49 = vrot.slane %v868_v46, %v872_v45  ;;  %v881_v59 = vrot.slane %v868_v46, %v880_v58  ;;  %s4013_s12 = sld [smem:[#allocation24_spill]] }
 0x1b7   : > { %2854 = vmatprep.subr.bf16.mxu1 %v3349_v17  ;;  %s4015_s10 = sld [smem:[#allocation25_spill]] }
 0x1b8   : > { %s4017_s5 = sld [smem:[#allocation26_spill]] }
 0x1b9   : > { %1020 = vmatpush1.bf16.msra.mxu0 %v3046_v23 }
 0x1ba   : > { %1021 = vmatprep.subr.bf16.mxu0 %v3047_v25  ;;  %2855 = vmatpush3.bf16.msra.mxu1 %v3062_v32 }
 0x1bb   : > { %2856 = vmatprep.subr.bf16.mxu1 %v3349_v17 }
 0x1bc   : > { %s4014_s26 = scalar_lea.vmem %s4013_s12, %s3588_s11 }
 0x1bd   : > { %1022 = vmatpush1.bf16.msra.mxu0 %v3049_v27  ;;  %s4016_s23 = scalar_lea.vmem %s4015_s10, %s3588_s11 }
 0x1be   : > { %1023 = vmatprep.subr.bf16.mxu0 %v3050_v28  ;;  %2857 = vmatpush3.bf16.msra.mxu1 %v3063_v35  ;;  %s4018_s7 = scalar_lea.vmem %s4017_s5, %s3588_s11 }
 0x1bf   : > { %2858 = vmatprep.subr.bf16.mxu1 %v3349_v17 }
 0x1c1   : > { %1024 = vmatpush1.bf16.msra.mxu0 %v3052_v29 }
 0x1c2   : > { %1025 = vmatprep.subr.bf16.mxu0 %v3053_v31  ;;  %2859 = vmatpush3.bf16.msra.mxu1 %v3064_v38 }
 0x1c3   : > { %2860 = vmatprep.subr.bf16.mxu1 %v3349_v17 }
 0x1c5   : > { %1026 = vmatpush1.bf16.msra.mxu0 %v3055_v33 }
 0x1c6   : > { %1027 = vmatprep.subr.bf16.mxu0 %v3056_v34  ;;  %2861 = vmatpush3.bf16.msra.mxu1 %v3065_v40 }
 0x1c7   : > { %2862 = vmatprep.subr.bf16.mxu1 %v3349_v17 }
 0x1c9   : > { %1028 = vmatpush1.bf16.msra.mxu0 %v3058_v36 }
 0x1ca   : > { %2892 = vmatprep.subr.bf16.mxu0 %v3349_v17  ;;  %2863 = vmatpush3.bf16.msra.mxu1 %v3066_v41 }
 0x1cb   : > { %2868 = vmatprep.subr.bf16.mxu1 %v3349_v17 }
 0x1cc   : > { %1046 = vmatmul.mubr.bf16.vlgmr.msra.gmra.mxu0 %v835_v39 }
 0x1cd   : > { %2894 = vmatprep.mubr.msk.bf16.mxu0 %vm3350_vm0, %v3349_v17  ;;  %2865 = vmatmul.mubr.bf16.vlgmr.msra.gmra.mxu1 %v835_v39 }
 0x1ce   : > { %2870 = vmatprep.mubr.msk.bf16.mxu1 %vm3350_vm0, %v3349_v17 }
 0x28c   : > { %v1047_v48 = vpop.f32.mrf.mxu0 }
 0x28d   : > { %v1048_v53 = vadd.f32 %v1047_v48, %v873_v49  ;;  %v1088_v60 = vpop.f32.mrf.mxu1 }
 0x28e   : > { %v1049_v50 = vpop.f32.mrf.mxu0  ;;  %v1089_v61 = vadd.f32 %v1088_v60, %v881_v59 }
 0x28f   : > { %v1050_v51 = vadd.f32 %v1049_v50, %v877_v47  ;;  %v1094_v57 = vpack.c.bf16 %v1048_v53, %v1048_v53  ;;  %v2866_v62 = vpop.f32.mrf.mxu1 }
 0x290   : > { %v1051_v52 = vpop.f32.mrf.mxu0  ;;  %v3723_v63 = vpack.c.bf16 %v1089_v61, %v1089_v61 }
 0x291   : > { %v1095_v54 = vpack.c.bf16 %v1050_v51, %v1050_v51  ;;  %v1091_v0 = vpop.f32.mrf.mxu1 }
 0x292   : > { %v1052_v55 = vpop.f32.mrf.mxu0  ;;  %v1170_v1 = vsel %vm1168_vm2, %v3723_v63, 0 }
 0x293   : > { %1216 = vrot.lane.b32.xlu1 %v1095_v54, %s3351_s15  ;;  %v1102_v56 = vsel %vm1097_vm1, %v1095_v54, 0  ;;  %v2867_v2 = vpop.f32.mrf.mxu1 }
 0x294   : > { %2869 = vmatpush3.bf16.xpose.msra.mxu1 %v1102_v56 }
 0x295   : > { %2874 = vmatprep.subr.bf16.mxu1 %v3349_v17 }
 0x297   : > { %1213 = vrot.lane.b32.xlu1 %v1094_v57, %s3351_s15 }
 0x29b   : > { %1327 = vrot.lane.b32.xlu1 %v1094_v57, %s3352_s4  ;;  %2871 = vmatmul.mubr.msk.bf16.vlgmr.msra.gmra.mxu1 %vm1097_vm1, %v1094_v57 }
 0x29c   : > { %2876 = vmatprep.mubr.msk.bf16.mxu1 %vm3350_vm0, %v3349_v17  ;;  %2875 = vmatpush3.bf16.msra.mxu1 %v1170_v1 }
 0x29d   : > { %2880 = vmatprep.subr.bf16.mxu1 %v3349_v17 }
 0x29f   : > { %1441 = vrot.lane.b32.xlu1 %v1095_v54, %s3353_s20 }
 0x2a3   : > { %1439 = vrot.lane.b32.xlu1 %v1094_v57, %s3353_s20 }
 0x305   : > { %v1217_v18 = vpop.permute.xlu1 %1216 }
 0x306   : > { %v1222_v29 = vsel %vm1097_vm1, %v1217_v18, 0 }
 0x309   : > { %v1214_v19 = vpop.permute.xlu1 %1213 }
 0x30d   : > { %v1328_v21 = vpop.permute.xlu1 %1327 }
 0x311   : > { %v1442_v24 = vpop.permute.xlu1 %1441 }
 0x312   : > { %v1447_v25 = vsel %vm1097_vm1, %v1442_v24, 0 }
 0x315   : > { %v1440_v30 = vpop.permute.xlu1 %1439 }
 0x35b   : > { %v1138_v3 = vpop.f32.mrf.mxu1 }
 0x35c   : > { %v1144_v5 = vmul.f32 0.17677669, %v1138_v3 }
 0x35d   : > { %v2872_v6 = vpop.f32.mrf.mxu1 }
 0x35e   : > { %v1151_v7 = vadd.f32 %v3733_v4, %v1144_v5 }
 0x35f   : > { %v1141_v8 = vpop.f32.mrf.mxu1 }
 0x360   : > { %v1153_v9 = vsel %vm1152_vm3, %v1151_v7, -inf }
 0x361   : > { %1154 = vmax.xlane.f32.xlu0 %v1153_v9  ;;  %v2873_v10 = vpop.f32.mrf.mxu1 }
 0x3ea   : > { %v1155_v11 = vpop.xlane.xlu0 %1154 }
 0x3eb   : > { %v1156_v12 = vsub.f32 %v1151_v7, %v1155_v11 }
 0x3ed   : > { %v1157_v13 = vmul.f32 1.442695, %v1156_v12 }
 0x3ef   : > { %3155 = vpow2.f32 %v1157_v13 }
 0x3fc   : > { %v3156_v14 = vpop.eup %3155 }
 0x3fd   : > { %v1159_v15 = vsel %vm1152_vm3, %v3156_v14, 0.0 }
 0x3fe   : > { %1160 = vadd.xlane.f32.xlu0 %v1159_v15 }
 0x414   : > { %1329 = vrot.lane.b32.xlu0 %v1095_v54, %s3352_s4 }
 0x487   : > { %v1161_v20 = vpop.xlane.xlu0 %1160 }
 0x488   : > { %3157 = vrcp.f32 %v1161_v20 }
 0x48b   : > { %v1330_v22 = vpop.permute.xlu0 %1329 }
 0x48c   : > { %v1335_v23 = vsel %vm1097_vm1, %v1330_v22, 0 }
 0x48d   : > { %2893 = vmatpush3.bf16.xpose.msra.mxu0 %v1335_v23 }
 0x48e   : > { %2904 = vmatprep.subr.bf16.mxu0 %v3349_v17 }
 0x494   : > { %2895 = vmatmul.mubr.msk.bf16.vlgmr.msra.gmra.mxu0 %vm1097_vm1, %v1328_v21 }
 0x495   : > { %v3158_v26 = vpop.eup %3157  ;;  %2905 = vmatpush3.bf16.xpose.msra.mxu0 %v1447_v25  ;;  %2906 = vmatprep.mubr.msk.bf16.mxu0 %vm3350_vm0, %v3349_v17 }
 0x496   : > { %v1163_v27 = vmul.f32 %v3158_v26, %v3156_v14  ;;  %2916 = vmatprep.subr.bf16.mxu0 %v3349_v17 }
 0x498   : > { %v1164_v28 = vpack.c.bf16 %v1163_v27, %v1163_v27 }
 0x49a   : > { %2877 = vmatmul.mubr.msk.bf16.vlgmr.msra.gmra.mxu1 %vm1152_vm3, %v1164_v28 }
 0x49b   : > { %2881 = vmatpush3.bf16.xpose.msra.mxu1 %v1222_v29  ;;  %2882 = vmatprep.mubr.msk.bf16.mxu1 %vm3350_vm0, %v3349_v17 }
 0x49c   : > { %2907 = vmatmul.mubr.msk.bf16.vlgmr.msra.gmra.mxu0 %vm1097_vm1, %v1440_v30  ;;  %2886 = vmatprep.subr.bf16.mxu1 %v3349_v17 }
 0x49d   : > { %2932 = vmatprep.mubr.msk.bf16.mxu0 %vm3350_vm0, %v3349_v17 }
 0x4a2   : > { %2883 = vmatmul.mubr.msk.bf16.vlgmr.msra.gmra.mxu1 %vm1097_vm1, %v1214_v19 }
 0x4a3   : > { %2888 = vmatprep.mubr.msk.bf16.mxu1 %vm3350_vm0, %v3349_v17 }
 0x554   : > { %v1371_v31 = vpop.f32.mrf.mxu0 }
 0x555   : > { %v1377_v32 = vmul.f32 0.17677669, %v1371_v31 }
 0x556   : > { %v2896_v33 = vpop.f32.mrf.mxu0 }
 0x557   : > { %v1378_v34 = vadd.f32 %v3733_v4, %v1377_v32  ;;  %v3067_v32 = vld [vmem:[%s3612_s9 + $0x38] sm:$0xff]   ;;  %v3068_v33 = vld [vmem:[%s3612_s9 + $0x30] sm:$0xff]  }
 0x558   : > { %v1374_v35 = vpop.f32.mrf.mxu0  ;;  %2917 = vmatpush3.bf16.msra.mxu0 %v3067_v32  ;;  %v3105_v32 = vld [vmem:[%s4012_s25 + $0x40] ss:$16 sps:$4 sm:$0xff]  }
 0x559   : > { %v1379_v36 = vsel %vm1152_vm3, %v1378_v34, -inf  ;;  %2918 = vmatprep.subr.bf16.mxu0 %v3349_v17  ;;  %v3070_v35 = vld [vmem:[%s3612_s9 + $0x20] sm:$0xff]  }
 0x55a   : > { %1380 = vmax.xlane.f32.xlu0 %v1379_v36  ;;  %v3759_v38 = vpop.f32.mrf.mxu1  ;;  %v2897_v39 = vpop.f32.mrf.mxu0  ;;  %v3071_v36 = vld [vmem:[%s3612_s9 + $0x18] sm:$0xff]  }
 0x55b   : > { %v3072_v39 = vld [vmem:[%s3612_s9 + $0x10] sm:$0xff]  }
 0x55c   : > { %v2878_v40 = vpop.f32.mrf.mxu1  ;;  %v1483_v41 = vpop.f32.mrf.mxu0  ;;  %2919 = vmatpush3.bf16.msra.mxu0 %v3068_v33  ;;  %v3108_v33 = vld [vmem:[%s4012_s25 + $0x48] ss:$16 sps:$4 sm:$0xff]  }
 0x55d   : > { %v1489_v51 = vmul.f32 0.17677669, %v1483_v41  ;;  %2920 = vmatprep.subr.bf16.mxu0 %v3349_v17  ;;  %v3073_v40 = vld [vmem:[%s3612_s9 + $0x8] sm:$0xff]  }
 0x55e   : > { %v1209_v42 = vpop.f32.mrf.mxu1  ;;  %v2908_v46 = vpop.f32.mrf.mxu0 }
 0x55f   : > { %v1490_v57 = vadd.f32 %v3733_v4, %v1489_v51  ;;  %v3074_v46 = vld [vmem:[%s3612_s9] sm:$0xff]  }
 0x560   : > { %v2879_v47 = vpop.f32.mrf.mxu1  ;;  %v1486_v48 = vpop.f32.mrf.mxu0 }
 0x561   : > { %v1491_v60 = vsel %vm1152_vm3, %v1490_v57, -inf }
 0x562   : > { %v1258_v49 = vpop.f32.mrf.mxu1  ;;  %v2909_v50 = vpop.f32.mrf.mxu0 }
 0x563   : > { %v1264_v52 = vmul.f32 0.17677669, %v1258_v49 }
 0x564   : > { %v2884_v53 = vpop.f32.mrf.mxu1 }
 0x565   : > { %v1265_v54 = vadd.f32 %v3733_v4, %v1264_v52 }
 0x566   : > { %v1261_v55 = vpop.f32.mrf.mxu1 }
 0x567   : > { %v1266_v56 = vsel %vm1152_vm3, %v1265_v54, -inf }
 0x568   : > { %1267 = vmax.xlane.f32.xlu1 %v1266_v56  ;;  %v2885_v59 = vpop.f32.mrf.mxu1 }
 0x56c   : > { %1492 = vmax.xlane.f32.xlu1 %v1491_v60 }
 0x5e3   : > { %v1381_v61 = vpop.xlane.xlu0 %1380 }
 0x5e4   : > { %v1382_v62 = vsub.f32 %v1378_v34, %v1381_v61  ;;  %v3069_v34 = vld [vmem:[%s3612_s9 + $0x28] sm:$0xff]  }
 0x5e5   : > { %2921 = vmatpush3.bf16.msra.mxu0 %v3069_v34  ;;  %v3113_v34 = vld [vmem:[%s4012_s25 + $0x24] ss:$16 sps:$4 sm:$0xff]  }
 0x5e6   : > { %v1383_v0 = vmul.f32 1.442695, %v1382_v62  ;;  %2922 = vmatprep.subr.bf16.mxu0 %v3349_v17 }
 0x5e8   : > { %3159 = vpow2.f32 %v1383_v0 }
 0x5e9   : > { %2923 = vmatpush3.bf16.msra.mxu0 %v3070_v35  ;;  %v3116_v35 = vld [vmem:[%s4012_s25 + $0x2c] ss:$16 sps:$4 sm:$0xff]  }
 0x5ea   : > { %2924 = vmatprep.subr.bf16.mxu0 %v3349_v17 }
 0x5ed   : > { %2925 = vmatpush3.bf16.msra.mxu0 %v3071_v36  ;;  %v3111_v36 = vld [vmem:[%s4012_s25 + $0x20] ss:$16 sps:$4 sm:$0xff]  }
 0x5ee   : > { %2926 = vmatprep.subr.bf16.mxu0 %v3349_v17 }
 0x5f1   : > { %v1268_v1 = vpop.xlane.xlu1 %1267  ;;  %2927 = vmatpush3.bf16.msra.mxu0 %v3072_v39  ;;  %v3114_v39 = vld [vmem:[%s4012_s25 + $0x28] ss:$16 sps:$4 sm:$0xff]  }
 0x5f2   : > { %v1269_v2 = vsub.f32 %v1265_v54, %v1268_v1  ;;  %2928 = vmatprep.subr.bf16.mxu0 %v3349_v17  ;;  %v2687_v1 = vld [vmem:[%s4014_s26] ss:$0 sm:$0xff] }
 0x5f4   : > { %v1270_v8 = vmul.f32 1.442695, %v1269_v2 }
 0x5f5   : > { %v3160_v3 = vpop.eup %3159  ;;  %v1493_v5 = vpop.xlane.xlu1 %1492  ;;  %2929 = vmatpush3.bf16.msra.mxu0 %v3073_v40  ;;  %v3119_v40 = vld [vmem:[%s4012_s25 + $0x4] ss:$16 sps:$4 sm:$0xff]  }
 0x5f6   : > { %v1494_v6 = vsub.f32 %v1490_v57, %v1493_v5  ;;  %v1385_v7 = vsel %vm1152_vm3, %v3160_v3, 0.0  ;;  %2930 = vmatprep.subr.bf16.mxu0 %v3349_v17 }
 0x5f7   : > { %1386 = vadd.xlane.f32.xlu0 %v1385_v7 }
 0x5f8   : > { %v1495_v9 = vmul.f32 1.442695, %v1494_v6 }
 0x5f9   : > { %2931 = vmatpush3.bf16.msra.mxu0 %v3074_v46  ;;  %v3120_v46 = vld [vmem:[%s4012_s25 + $0x8] ss:$16 sps:$4 sm:$0xff]  }
 0x5fa   : > { %3161 = vpow2.f32 %v1495_v9  ;;  %v3077_v9 = vld [vmem:[%s4012_s25 + $0xe4] ss:$16 sps:$4 sm:$0xff]  }
 0x5fb   : > { %3163 = vpow2.f32 %v1270_v8  ;;  %v3075_v8 = vld [vmem:[%s4012_s25 + $0xe0] ss:$16 sps:$4 sm:$0xff]  }
 0x607   : > { %v3162_v4 = vpop.eup %3161 }
 0x608   : > { %v1497_v10 = vsel %vm1152_vm3, %v3162_v4, 0.0  ;;  %v3164_v11 = vpop.eup %3163 }
 0x609   : > { %1498 = vadd.xlane.f32.xlu1 %v1497_v10  ;;  %v1272_v12 = vsel %vm1152_vm3, %v3164_v11, 0.0  ;;  %v3080_v10 = vld [vmem:[%s4012_s25 + $0xec] ss:$16 sps:$4 sm:$0xff]  }
 0x60a   : > { %1965 = vmatprep.subr.bf16.mxu0 %v3080_v10  ;;  %v3140_v10 = vld [vmem:[%s3645_s2 + $0xd8] sm:$0xff]  }
 0x60d   : > { %1279 = vrot.lane.b32.xlu0 %v3723_v63, %s3351_s15  ;;  %1273 = vadd.xlane.f32.xlu1 %v1272_v12  ;;  %v3081_v12 = vld [vmem:[%s4012_s25 + $0xc0] ss:$16 sps:$4 sm:$0xff]  }
 0x61e   : > { %1391 = vrot.lane.b32.xlu1 %v3723_v63, %s3352_s4 }
 0x622   : > { %1503 = vrot.lane.b32.xlu1 %v3723_v63, %s3353_s20 }
 0x680   : > { %v1387_v13 = vpop.xlane.xlu0 %1386 }
 0x684   : > { %v1280_v14 = vpop.permute.xlu0 %1279 }
 0x685   : > { %v1285_v15 = vsel %vm1168_vm2, %v1280_v14, 0 }
 0x686   : > { %2887 = vmatpush3.bf16.msra.mxu1 %v1285_v15 }
 0x687   : > { %2898 = vmatprep.subr.bf16.mxu1 %v3349_v17 }
 0x692   : > { %v1499_v18 = vpop.xlane.xlu1 %1498 }
 0x696   : > { %v1274_v19 = vpop.xlane.xlu1 %1273 }
 0x697   : > { %3165 = vrcp.f32 %v1274_v19  ;;  %v3089_v19 = vld [vmem:[%s4012_s25 + $0xa4] ss:$16 sps:$4 sm:$0xff]  }
 0x698   : > { %3167 = vrcp.f32 %v1387_v13 }
 0x699   : > { %3169 = vrcp.f32 %v1499_v18 }
 0x69a   : > { %v1392_v22 = vpop.permute.xlu1 %1391 }
 0x69b   : > { %v1397_v25 = vsel %vm1168_vm2, %v1392_v22, 0  ;;  %v3090_v22 = vld [vmem:[%s4012_s25 + $0xa8] ss:$16 sps:$4 sm:$0xff]  }
 0x69e   : > { %v1504_v26 = vpop.permute.xlu1 %1503 }
 0x69f   : > { %v1509_v29 = vsel %vm1168_vm2, %v1504_v26, 0  ;;  %v3101_v26 = vld [vmem:[%s4012_s25 + $0x64] ss:$16 sps:$4 sm:$0xff]  }
 0x6a4   : > { %v3166_v20 = vpop.eup %3165 }
 0x6a5   : > { %v1276_v21 = vmul.f32 %v3166_v20, %v3164_v11  ;;  %v3168_v24 = vpop.eup %3167  ;;  %v3086_v11 = vld [vmem:[%s4012_s25 + $0xcc] ss:$16 sps:$4 sm:$0xff]  }
 0x6a6   : > { %v1389_v63 = vmul.f32 %v3168_v24, %v3160_v3  ;;  %v3170_v28 = vpop.eup %3169  ;;  %v3092_v20 = vld [vmem:[%s4012_s25 + $0xac] ss:$16 sps:$4 sm:$0xff]   ;;  %v3095_v24 = vld [vmem:[%s4012_s25 + $0x84] ss:$16 sps:$4 sm:$0xff]  }
 0x6a7   : > { %v1277_v23 = vpack.c.bf16 %v1276_v21, %v1276_v21  ;;  %v1501_v30 = vmul.f32 %v3170_v28, %v3162_v4  ;;  %v3078_v4 = vld [vmem:[%s4012_s25 + $0xe8] ss:$16 sps:$4 sm:$0xff]   ;;  %v3087_v21 = vld [vmem:[%s4012_s25 + $0xa0] ss:$16 sps:$4 sm:$0xff]  }
 0x6a8   : > { %v1390_v27 = vpack.c.bf16 %v1389_v63, %v1389_v63  ;;  %v3098_v63 = vld [vmem:[%s4012_s25 + $0x8c] ss:$16 sps:$4 sm:$0xff]   ;;  %v3099_v28 = vld [vmem:[%s4012_s25 + $0x60] ss:$16 sps:$4 sm:$0xff]  }
 0x6a9   : > { %2889 = vmatmul.mubr.msk.bf16.vlgmr.msra.gmra.mxu1 %vm1152_vm3, %v1277_v23  ;;  %v1502_v31 = vpack.c.bf16 %v1501_v30, %v1501_v30  ;;  %v3093_v23 = vld [vmem:[%s4012_s25 + $0x80] ss:$16 sps:$4 sm:$0xff]   ;;  %v3107_v30 = vld [vmem:[%s4012_s25 + $0x44] ss:$16 sps:$4 sm:$0xff]  }
 0x6aa   : > { %2899 = vmatpush3.bf16.msra.mxu1 %v1397_v25  ;;  %2900 = vmatprep.mubr.msk.bf16.mxu1 %vm3350_vm0, %v3349_v17  ;;  %v3096_v25 = vld [vmem:[%s4012_s25 + $0x88] ss:$16 sps:$4 sm:$0xff]  }
 0x6ab   : > { %2910 = vmatprep.subr.bf16.mxu1 %v3349_v17 }
 0x6b1   : > { %2901 = vmatmul.mubr.msk.bf16.vlgmr.msra.gmra.mxu1 %vm1152_vm3, %v1390_v27  ;;  %v3104_v27 = vld [vmem:[%s4012_s25 + $0x6c] ss:$16 sps:$4 sm:$0xff]  }
 0x6b2   : > { %2911 = vmatpush3.bf16.msra.mxu1 %v1509_v29  ;;  %2912 = vmatprep.mubr.msk.bf16.mxu1 %vm3350_vm0, %v3349_v17  ;;  %v3102_v29 = vld [vmem:[%s4012_s25 + $0x68] ss:$16 sps:$4 sm:$0xff]  }
 0x6b3   : > { %1924 = vmatprep.subr.bf16.mxu1 %v3077_v9  ;;  %v3138_v9 = vld [vmem:[%s3645_s2 + $0xa0] sm:$0xff]  }
 0x6b9   : > { %2913 = vmatmul.mubr.msk.bf16.vlgmr.msra.gmra.mxu1 %vm1152_vm3, %v1502_v31  ;;  %v3110_v31 = vld [vmem:[%s4012_s25 + $0x4c] ss:$16 sps:$4 sm:$0xff]  }
 0x6ba   : > { %1956 = vmatprep.mubr.bf16.mxu1 %v3348_v16  ;;  %1925 = vmatpush1.bf16.msra.mxu1 %v3075_v8  ;;  %v3137_v8 = vld [vmem:[%s3645_s2 + $0x20] sm:$0xff]  }
 0x769   : > { %v1321_v41 = vpop.f32.mrf.mxu1 }
 0x76a   : > { %1552 = vrot.lane.b32.xlu0 %v1321_v41, %s3353_s20  ;;  %v3122_v41 = vld [vmem:[%s4012_s25 + $0xc] ss:$16 sps:$4 sm:$0xff]  }
 0x76b   : > { %v2890_v42 = vpop.f32.mrf.mxu1 }
 0x76c   : > { %v3117_v42 = vld [vmem:[%s4012_s25] ss:$16 sps:$4 sm:$0xff]  }
 0x76d   : > { %v1324_v47 = vpop.f32.mrf.mxu1 }
 0x76e   : > { %v3123_v47 = vld [vmem:[%s3645_s2 + $0x78] sm:$0xff]  }
 0x76f   : > { %v2891_v48 = vpop.f32.mrf.mxu1 }
 0x770   : > { %v3124_v48 = vld [vmem:[%s3645_s2 + $0xf8] sm:$0xff]  }
 0x771   : > { %v1433_v49 = vpop.f32.mrf.mxu1 }
 0x772   : > { %1556 = vrot.lane.b32.xlu1 %v1433_v49, %s3352_s4 }
 0x773   : > { %v2902_v50 = vpop.f32.mrf.mxu1 }
 0x775   : > { %v1436_v51 = vpop.f32.mrf.mxu1 }
 0x777   : > { %v2903_v52 = vpop.f32.mrf.mxu1 }
 0x779   : > { %v1545_v53 = vpop.f32.mrf.mxu1 }
 0x77a   : > { %1560 = vrot.lane.b32.xlu0 %v1545_v53, %s3351_s15  ;;  %v2696_v53 = vld [vmem:[%s4016_s23] ss:$0 sm:$0xff] }
 0x77b   : > { %v2914_v54 = vpop.f32.mrf.mxu1 }
 0x77d   : > { %v1548_v55 = vpop.f32.mrf.mxu1 }
 0x77e   : > { %v2697_v55 = vld [vmem:[%s4018_s7] ss:$0 sm:$0xff] }
 0x77f   : > { %v2915_v56 = vpop.f32.mrf.mxu1 }
 0x7dc   : > { %v1553_v57 = vpop.permute.xlu0 %1552 }
 0x7dd   : > { %v1563_v59 = vsel %vm1097_vm1, %v3759_v38, %v1553_v57 }
 0x7e4   : > { %v1557_v17 = vpop.permute.xlu1 %1556 }
 0x7e5   : > { %v1565_v60 = vsel %vm1564_vm4, %v1563_v59, %v1557_v17  ;;  %v3125_v17 = vld [vmem:[%s3645_s2 + $0x38] sm:$0xff]  }
 0x7e6   : > { %v3126_v59 = vld [vmem:[%s3645_s2 + $0xb8] sm:$0xff]  }
 0x7ec   : > { %v1561_v61 = vpop.permute.xlu0 %1560 }
 0x7ed   : > { %v1567_v62 = vsel %vm1566_vm5, %v1565_v60, %v1561_v61  ;;  %v3127_v61 = vld [vmem:[%s3645_s2 + $0x70] sm:$0xff]  }
 0x7ee   : > { %v1568_v0 = vpack.c.bf16 %v1567_v62, %v1567_v62  ;;  %v3128_v62 = vld [vmem:[%s3645_s2 + $0xf0] sm:$0xff]  }
 0x7f0   : > { %2933 = vmatmul.mubr.bf16.vlgmr.msra.gmra.mxu0 %v1568_v0  ;;  %v3129_v0 = vld [vmem:[%s3645_s2 + $0x30] sm:$0xff]  }
 0x7f1   : > { %1997 = vmatprep.mubr.bf16.mxu0 %v3348_v16  ;;  %v3083_v16 = vld [vmem:[%s4012_s25 + $0xc4] ss:$16 sps:$4 sm:$0xff]   ;;  %1966 = vmatpush1.bf16.msra.mxu0 %v3078_v4  ;;  %v3139_v4 = vld [vmem:[%s3645_s2 + $0x58] sm:$0xff]  }
 0x7f2   : > { %1926 = vmatprep.subr.bf16.mxu1 %v3083_v16  ;;  %1967 = vmatprep.subr.bf16.mxu0 %v3086_v11  ;;  %v3141_v16 = vld [vmem:[%s3645_s2 + $0x18] sm:$0xff]  }
 0x7f3   : > { %1927 = vmatpush1.bf16.msra.mxu1 %v3081_v12  ;;  %v3142_v11 = vld [vmem:[%s3645_s2 + $0x98] sm:$0xff]   ;;  %v3143_v12 = vld [vmem:[%s3645_s2 + $0x50] sm:$0xff]  }
 0x7f4   : > { %1928 = vmatprep.subr.bf16.mxu1 %v3089_v19  ;;  %v3149_v19 = vld [vmem:[%s3645_s2 + $0x8] sm:$0xff]  }
 0x7f7   : > { %1929 = vmatpush1.bf16.msra.mxu1 %v3087_v21  ;;  %v3151_v21 = vld [vmem:[%s3645_s2 + $0x40] sm:$0xff]  }
 0x7f8   : > { %1930 = vmatprep.subr.bf16.mxu1 %v3095_v24  ;;  %v3154_v24 = vld [vmem:[%s3645_s2 + $0x80] sm:$0xff]  }
 0x7fb   : > { %1931 = vmatpush1.bf16.msra.mxu1 %v3093_v23  ;;  %v3153_v23 = vld [vmem:[%s3645_s2] sm:$0xff]  }
 0x7fc   : > { %1932 = vmatprep.subr.bf16.mxu1 %v3101_v26 }
 0x7ff   : > { %1933 = vmatpush1.bf16.msra.mxu1 %v3099_v28 }
 0x800   : > { %1934 = vmatprep.subr.bf16.mxu1 %v3107_v30 }
 0x803   : > { %1935 = vmatpush1.bf16.msra.mxu1 %v3105_v32 }
 0x804   : > { %1936 = vmatprep.subr.bf16.mxu1 %v3113_v34 }
 0x807   : > { %1937 = vmatpush1.bf16.msra.mxu1 %v3111_v36 }
 0x808   : > { %1938 = vmatprep.subr.bf16.mxu1 %v3119_v40 }
 0x80b   : > { %1939 = vmatpush1.bf16.msra.mxu1 %v3117_v42 }
 0x80c   : > { %2804 = vmatprep.subr.bf16.mxu1 %v3123_v47 }
 0x8b0   : > { %v1674_v2 = vpop.f32.mrf.mxu0 }
 0x8b1   : > { %v1675_v38 = vadd.f32 %v2687_v1, %v1674_v2  ;;  %v3130_v1 = vld [vmem:[%s3645_s2 + $0xb0] sm:$0xff]   ;;  %v3131_v2 = vld [vmem:[%s3645_s2 + $0x68] sm:$0xff]  }
 0x8b2   : > { %v2934_v3 = vpop.f32.mrf.mxu0 }
 0x8b3   : > { %v1680_v5 = vadd.f32 %v1675_v38, %v3682_v37  ;;  %v3084_v37 = vld [vmem:[%s4012_s25 + $0xc8] ss:$16 sps:$4 sm:$0xff]  }
 0x8b4   : > { %v1677_v6 = vpop.f32.mrf.mxu0  ;;  %1968 = vmatpush1.bf16.msra.mxu0 %v3084_v37  ;;  %v3132_v38 = vld [vmem:[%s3645_s2 + $0xe8] sm:$0xff]   ;;  %v3144_v37 = vld [vmem:[%s3645_s2 + $0xd0] sm:$0xff]  }
 0x8b5   : > { %1683 = vadd.xlane.f32.xlu1 %v1680_v5  ;;  %1969 = vmatprep.subr.bf16.mxu0 %v3092_v20  ;;  %v3133_v3 = vld [vmem:[%s3645_s2 + $0x28] sm:$0xff]   ;;  %v3135_v6 = vld [vmem:[%s3645_s2 + $0x60] sm:$0xff]  }
 0x8b6   : > { %v2935_v7 = vpop.f32.mrf.mxu0  ;;  %v3150_v20 = vld [vmem:[%s3645_s2 + $0x88] sm:$0xff]  }
 0x8b7   : > { %v3136_v7 = vld [vmem:[%s3645_s2 + $0xe0] sm:$0xff]  }
 0x8b8   : > { %1970 = vmatpush1.bf16.msra.mxu0 %v3090_v22  ;;  %v3152_v22 = vld [vmem:[%s3645_s2 + $0xc0] sm:$0xff]  }
 0x8b9   : > { %1971 = vmatprep.subr.bf16.mxu0 %v3098_v63  ;;  %v1758_v63 = vsub.s32 3, %v3701_v43 }
 0x8bc   : > { %1972 = vmatpush1.bf16.msra.mxu0 %v3096_v25  ;;  %v1742_v25 = vld [vmem:[%s3630_s16] sm:$0xf] }
 0x8bd   : > { %1973 = vmatprep.subr.bf16.mxu0 %v3104_v27  ;;  %v1747_v26 = vrot.slane %v1742_v25, %v872_v45  ;;  %v1755_v27 = vrot.slane %v1742_v25, %v880_v58  ;;  %v1751_v30 = vrot.slane %v1742_v25, %v876_v44 }
 0x8c0   : > { %1974 = vmatpush1.bf16.msra.mxu0 %v3102_v29 }
 0x8c1   : > { %1975 = vmatprep.subr.bf16.mxu0 %v3110_v31  ;;  %v1759_v31 = vrot.slane %v1742_v25, %v1758_v63  ;;  %v2763_v63 = vld [vmem:[%s790_s6] ss:$0 sm:$0xff] }
 0x8c4   : > { %1976 = vmatpush1.bf16.msra.mxu0 %v3108_v33 }
 0x8c5   : > { %1977 = vmatprep.subr.bf16.mxu0 %v3116_v35 }
 0x8c8   : > { %1978 = vmatpush1.bf16.msra.mxu0 %v3114_v39 }
 0x8c9   : > { %1979 = vmatprep.subr.bf16.mxu0 %v3122_v41 }
 0x8cc   : > { %1980 = vmatpush1.bf16.msra.mxu0 %v3120_v46 }
 0x8cd   : > { %2826 = vmatprep.subr.bf16.mxu0 %v3124_v48 }
 0x93e   : > { %v1684_v13 = vpop.xlane.xlu1 %1683 }
 0x93f   : > { %v1686_v14 = vmul.f32 0.0078125, %v1684_v13  ;;  %v3145_v13 = vld [vmem:[%s3645_s2 + $0x10] sm:$0xff]  }
 0x941   : > { %v1687_v15 = vsub.f32 %v1680_v5, %v1686_v14  ;;  %v3134_v5 = vld [vmem:[%s3645_s2 + $0xa8] sm:$0xff]   ;;  %v3146_v14 = vld [vmem:[%s3645_s2 + $0x90] sm:$0xff]  }
 0x943   : > { %v1688_v18 = vmul.f32 %v1687_v15, %v1687_v15 }
 0x945   : > { %1689 = vadd.xlane.f32.xlu0 %v1688_v18  ;;  %v3148_v18 = vld [vmem:[%s3645_s2 + $0xc8] sm:$0xff]  }
 0x9ce   : > { %v1690_v49 = vpop.xlane.xlu0 %1689 }
 0x9cf   : > { %v1691_v50 = vmul.f32 0.0078125, %v1690_v49 }
 0x9d1   : > { %v1692_v51 = vadd.f32 1e-12, %v1691_v50 }
 0x9d3   : > { %3171 = vrsqrt.f32 %v1692_v51 }
 0x9e0   : > { %v3172_v52 = vpop.eup %3171 }
 0x9e1   : > { %v1694_v54 = vmul.f32 %v3172_v52, %v1687_v15  ;;  %v3147_v15 = vld [vmem:[%s3645_s2 + $0x48] sm:$0xff]  }
 0x9e3   : > { %v1701_v56 = vmul.f32 %v2696_v53, %v1694_v54 }
 0x9e5   : > { %v3858_v57 = vadd.f32 %v2697_v55, %v1701_v56 }
 0x9e7   : > { %v1709_v60 = vpack.c.bf16 %v3858_v57, %v3858_v57 }
 0x9e9   : > { %1957 = vmatmul.mubr.bf16.vlgmr.msra.gmra.mxu1 %v1709_v60  ;;  %1998 = vmatmul.mubr.bf16.vlgmr.msra.gmra.mxu0 %v1709_v60 }
 0x9ea   : > { %2805 = vmatpush3.bf16.msra.mxu1 %v3125_v17  ;;  %2827 = vmatpush3.bf16.msra.mxu0 %v3126_v59 }
 0x9eb   : > { %2806 = vmatprep.subr.bf16.mxu1 %v3127_v61  ;;  %2828 = vmatprep.subr.bf16.mxu0 %v3128_v62 }
 0x9ee   : > { %2807 = vmatpush3.bf16.msra.mxu1 %v3129_v0  ;;  %2829 = vmatpush3.bf16.msra.mxu0 %v3130_v1 }
 0x9ef   : > { %2808 = vmatprep.subr.bf16.mxu1 %v3131_v2  ;;  %2830 = vmatprep.subr.bf16.mxu0 %v3132_v38 }
 0x9f2   : > { %2809 = vmatpush3.bf16.msra.mxu1 %v3133_v3  ;;  %2831 = vmatpush3.bf16.msra.mxu0 %v3134_v5 }
 0x9f3   : > { %2810 = vmatprep.subr.bf16.mxu1 %v3135_v6  ;;  %2832 = vmatprep.subr.bf16.mxu0 %v3136_v7  ;;  %v2730_v7 = vld [vmem:[%s787_s27] ss:$0 sm:$0xff] }
 0x9f6   : > { %2811 = vmatpush3.bf16.msra.mxu1 %v3137_v8  ;;  %2833 = vmatpush3.bf16.msra.mxu0 %v3138_v9 }
 0x9f7   : > { %2812 = vmatprep.subr.bf16.mxu1 %v3139_v4  ;;  %2834 = vmatprep.subr.bf16.mxu0 %v3140_v10 }
 0x9fa   : > { %2813 = vmatpush3.bf16.msra.mxu1 %v3141_v16  ;;  %2835 = vmatpush3.bf16.msra.mxu0 %v3142_v11 }
 0x9fb   : > { %2814 = vmatprep.subr.bf16.mxu1 %v3143_v12  ;;  %2836 = vmatprep.subr.bf16.mxu0 %v3144_v37 }
 0x9fe   : > { %2815 = vmatpush3.bf16.msra.mxu1 %v3145_v13  ;;  %2837 = vmatpush3.bf16.msra.mxu0 %v3146_v14 }
 0x9ff   : > { %2816 = vmatprep.subr.bf16.mxu1 %v3147_v15  ;;  %2838 = vmatprep.subr.bf16.mxu0 %v3148_v18 }
 0xa02   : > { %2817 = vmatpush3.bf16.msra.mxu1 %v3149_v19  ;;  %2839 = vmatpush3.bf16.msra.mxu0 %v3150_v20 }
 0xa03   : > { %2818 = vmatprep.subr.bf16.mxu1 %v3151_v21  ;;  %2840 = vmatprep.subr.bf16.mxu0 %v3152_v22 }
 0xa06   : > { %2819 = vmatpush3.bf16.msra.mxu1 %v3153_v23  ;;  %2841 = vmatpush3.bf16.msra.mxu0 %v3154_v24 }
 0xaa9   : > { %v1958_v28 = vpop.f32.mrf.mxu1  ;;  %v1999_v29 = vpop.f32.mrf.mxu0 }
 0xaaa   : > { %v1959_v32 = vadd.f32 %v1958_v28, %v1747_v26  ;;  %v2000_v33 = vadd.f32 %v1999_v29, %v1755_v27 }
 0xaab   : > { %v1960_v34 = vpop.f32.mrf.mxu1  ;;  %v2001_v35 = vpop.f32.mrf.mxu0 }
 0xaac   : > { %v2010_v36 = vmul.f32 0.70710677, %v1959_v32  ;;  %v2012_v39 = vmul.f32 0.70710677, %v2000_v33  ;;  %v1961_v40 = vadd.f32 %v1960_v34, %v1751_v30  ;;  %v2002_v41 = vadd.f32 %v2001_v35, %v1759_v31 }
 0xaad   : > { %v1962_v42 = vpop.f32.mrf.mxu1  ;;  %v2003_v46 = vpop.f32.mrf.mxu0  ;;  %v2006_v52 = vmul.f32 0.5, %v1959_v32  ;;  %v2008_v54 = vmul.f32 0.5, %v2000_v33 }
 0xaae   : > { %3173 = verf.f32 %v2010_v36  ;;  %v2011_v45 = vmul.f32 0.70710677, %v1961_v40  ;;  %v2013_v48 = vmul.f32 0.70710677, %v2002_v41  ;;  %v2007_v55 = vmul.f32 0.5, %v1961_v40 }
 0xaaf   : > { %3175 = verf.f32 %v2012_v39  ;;  %v1963_v58 = vpop.f32.mrf.mxu1  ;;  %v2004_v47 = vpop.f32.mrf.mxu0  ;;  %v2009_v59 = vmul.f32 0.5, %v2002_v41 }
 0xab0   : > { %3177 = verf.f32 %v2011_v45 }
 0xab1   : > { %3179 = verf.f32 %v2013_v48 }
 0xabb   : > { %v3174_v43 = vpop.eup %3173 }
 0xabc   : > { %v3176_v44 = vpop.eup %3175  ;;  %v2018_v49 = vadd.f32 1.0, %v3174_v43 }
 0xabd   : > { %v2020_v50 = vadd.f32 1.0, %v3176_v44  ;;  %v3178_v51 = vpop.eup %3177 }
 0xabe   : > { %v3180_v53 = vpop.eup %3179  ;;  %v2019_v56 = vadd.f32 1.0, %v3178_v51  ;;  %v2022_v17 = vmul.f32 %v2018_v49, %v2006_v52 }
 0xabf   : > { %v2021_v60 = vadd.f32 1.0, %v3180_v53  ;;  %v2024_v61 = vmul.f32 %v2020_v50, %v2008_v54 }
 0xac0   : > { %v2023_v62 = vmul.f32 %v2019_v56, %v2007_v55  ;;  %v2026_v2 = vpack.c.bf16 %v2022_v17, %v2022_v17 }
 0xac1   : > { %v2025_v0 = vmul.f32 %v2021_v60, %v2009_v59  ;;  %v2028_v3 = vpack.c.bf16 %v2024_v61, %v2024_v61 }
 0xac2   : > { %v2027_v1 = vpack.c.bf16 %v2023_v62, %v2023_v62 }
 0xac3   : > { %v2029_v38 = vpack.c.bf16 %v2025_v0, %v2025_v0 }
 0xac4   : > { %2325 = vmatprep.mubr.bf16.mxu1 %v2027_v1 }
 0xac5   : > { %2365 = vmatprep.mubr.bf16.mxu0 %v2029_v38  ;;  %2326 = vmatmul.mubr.bf16.vlgmr.msra.gmra.mxu1 %v2026_v2 }
 0xac6   : > { %2366 = vmatmul.mubr.bf16.vlgmr.msra.gmra.mxu0 %v2028_v3 }
 0xb85   : > { %v2820_v5 = vpop.f32.mrf.mxu1 }
 0xb86   : > { %v2842_v6 = vpop.f32.mrf.mxu0 }
 0xb87   : > { %v2821_v8 = vpop.f32.mrf.mxu1 }
 0xb88   : > { %v2822_v9 = vadd.f32 %v2821_v8, %v2820_v5  ;;  %v2843_v4 = vpop.f32.mrf.mxu0 }
 0xb89   : > { %v2823_v10 = vpop.f32.mrf.mxu1  ;;  %v2844_v11 = vadd.f32 %v2843_v4, %v2842_v6 }
 0xb8a   : > { %v2328_v16 = vadd.f32 %v2822_v9, %v2730_v7  ;;  %v2845_v12 = vpop.f32.mrf.mxu0 }
 0xb8b   : > { %v2824_v37 = vpop.f32.mrf.mxu1 }
 0xb8c   : > { %v2368_v13 = vadd.f32 %v2844_v11, %v2328_v16  ;;  %v2846_v14 = vpop.f32.mrf.mxu0 }
 0xb8e   : > { %v2373_v15 = vadd.f32 %v2368_v13, %v3858_v57  ;;  %v2764_v57 = vld [vmem:[%s793_s8] ss:$0 sm:$0xff] }
 0xb90   : > { %2376 = vadd.xlane.f32.xlu0 %v2373_v15 }
 0xc19   : > { %v2377_v18 = vpop.xlane.xlu0 %2376 }
 0xc1a   : > { %v2378_v19 = vmul.f32 0.0078125, %v2377_v18 }
 0xc1c   : > { %v2379_v20 = vsub.f32 %v2373_v15, %v2378_v19 }
 0xc1e   : > { %v2380_v21 = vmul.f32 %v2379_v20, %v2379_v20 }
 0xc20   : > { %2381 = vadd.xlane.f32.xlu1 %v2380_v21 }
 0xca9   : > { %v2382_v22 = vpop.xlane.xlu1 %2381 }
 0xcaa   : > { %v2383_v23 = vmul.f32 0.0078125, %v2382_v22 }
 0xcac   : > { %v2384_v24 = vadd.f32 1e-12, %v2383_v23 }
 0xcae   : > { %3181 = vrsqrt.f32 %v2384_v24 }
 0xcbb   : > { %v3182_v25 = vpop.eup %3181 }
 0xcbc   : > { %v2386_v26 = vmul.f32 %v3182_v25, %v2379_v20 }
 0xcbe   : > { %v2393_v27 = vmul.f32 %v2763_v63, %v2386_v26 }
 0xcc0   : > { %v2400_v28 = vadd.f32 %v2764_v57, %v2393_v27 }
 0xcc2   : > { %2401 = vst [vmem:[%s3643_s28] sm:$0xff] %v2400_v28 }
 0xcc3 PF: > { %s4022_s20 = sld [smem:[#allocation13_spill]] }
 0xcc4   : > { %s4023_s21 = sld [smem:[#allocation9_spill]] }
 0xcc5   : > { %s4024_s22 = sld [smem:[#allocation10_spill]] }
 0xcc6   : > { %s4025_s23 = sld [smem:[#allocation16_spill]] }
 0xcc7   : > { %s4026_s24 = sld [smem:[#allocation11_spill]] }
 0xcc8   : > { %s4027_s25 = sld [smem:[#allocation12_spill]] }
 0xcc9   : > { %s32_s28 = sadd.s32 1, %s4022_s20   ;;  %s4028_s26 = sld [smem:[#allocation14_spill]] }
 0xcca   : > { %p29_p7 = scmp.ge.s32.totalorder %s32_s28, 6   ;;  %s4029_s27 = sld [smem:[#allocation15_spill]] }
 0xccc   :  { %31 = sbr.rel (!%p29_p7) target bundleno = 24 (0x18), region = 185 }
 0xcd1   :  { %2421 = vsyncpa [#allocation3], 1 }
 0xcd2   :  { %2423 = vsyncpa [#allocation3 + $0x1], 1 }
 0xcd3   :  { %2424 = vsyncpa [#allocation5], 1 }
 0xcd4   :  { %2426 = vsyncpa [#allocation5 + $0x1], 1 }

</bundles_post_ra>
